<compile_context>
chip_gen: v5e
topology: v5e:2x2
jax: 0.10.0
libtpu: 0.0.40
codegen_flags: <defaults>
</compile_context>

<pallas_src>
import numpy as np
import jax
import jax.numpy as jnp
from jax.experimental import pallas as pl
from jax.experimental.pallas import tpu as pltpu

_HI = jax.lax.Precision.HIGHEST


# ----------------------------- kernel helpers --------------------------------

def _dot(a, b):
    # 0/1 selection matmul; HIGHEST keeps the f32 data exact through the MXU.
    return jnp.dot(a, b, precision=_HI, preferred_element_type=jnp.float32)


def _pool_pair(xmax, xmin, rmat, cmat, k):
    """(k,k) max-pool of xmax and min-pool of xmin (2-D arrays).

    Windowing = elementwise max/min of k shifted copies (cheap, lane-dense);
    compaction (take every k-th row / column) = one small 0/1 selection matmul
    per direction, which runs on the MXU and overlaps with the DMA pipeline.
    """
    same = xmin is xmax          # level 1 passes (t, t): share the slices
    # rows (sublane direction)
    nr = xmax.shape[0] - (k - 1)
    wmax = xmax[0:nr]
    wmin = wmax if same else xmin[0:nr]
    for s in range(1, k):
        smax = xmax[s:s + nr]
        smin = smax if same else xmin[s:s + nr]
        wmax = jnp.maximum(wmax, smax)
        wmin = jnp.minimum(wmin, smin)
    rmaxp = _dot(rmat, wmax)
    rminp = _dot(rmat, wmin)
    # columns (lane direction)
    nc = rmaxp.shape[1] - (k - 1)
    cmax = rmaxp[:, 0:nc]
    cmin = rminp[:, 0:nc]
    for s in range(1, k):
        cmax = jnp.maximum(cmax, rmaxp[:, s:s + nc])
        cmin = jnp.minimum(cmin, rminp[:, s:s + nc])
    return _dot(cmax, cmat), _dot(cmin, cmat)


def _masks4(tmax, tmin):
    # torch concat order: [F_small, F_large, B_small, B_large].
    # Both masks are monotone in t, so they commute with max/min pooling.
    return (
        jnp.maximum(tmin - 0.75, 0.0) * 4.0,   # F_small = minpool(F_mask)
        jnp.maximum(tmax - 0.75, 0.0) * 4.0,   # F_large = maxpool(F_mask)
        jnp.maximum(0.25 - tmax, 0.0) * 4.0,   # B_small = minpool(B_mask)
        jnp.maximum(0.25 - tmin, 0.0) * 4.0,   # B_large = maxpool(B_mask)
    )


# ------------------------------- kernel ---------------------------------------

def _trimap_kernel(img_ref, r4, c4, r2a, c2a, r2b, c2b, r2c, c2c,
                   s0_ref, s2_ref, s3_ref, s4_ref, s5_ref):
    r = pl.program_id(1)
    t = img_ref[0, 0].astype(jnp.float32)                    # (S, W) trimap strip

    # stage0: full-resolution masks, written straight back in NCHW layout.
    s0_ref[0, 0] = (jnp.maximum(t - 0.75, 0.0) * 4.0).astype(s0_ref.dtype)
    s0_ref[0, 1] = (jnp.maximum(0.25 - t, 0.0) * 4.0).astype(s0_ref.dtype)

    # Hierarchical max/min pooling of the raw trimap: 4x4, then 2x2 three times.
    m1, n1 = _pool_pair(t, t, r4[...], c4[...], 4)           # (S/4,  W/4)
    m2, n2 = _pool_pair(m1, n1, r2a[...], c2a[...], 2)       # (S/8,  W/8)
    m3, n3 = _pool_pair(m2, n2, r2b[...], c2b[...], 2)       # (S/16, W/16)
    m4, n4 = _pool_pair(m3, n3, r2c[...], c2c[...], 2)       # (S/32, W/32)

    # stage2 is streamed per strip (its block second-minor 8*TR is 8-aligned).
    for c, p in enumerate(_masks4(m1, n1)):
        s2_ref[0, c] = p.astype(s2_ref.dtype)

    # stages 3-5 are tiny: their full-height blocks stay resident in VMEM
    # across the strip sweep and are written back once per batch element.
    for ref, tmax, tmin in ((s3_ref, m2, n2), (s4_ref, m3, n3), (s5_ref, m4, n4)):
        rk = tmax.shape[0]
        row0 = r * rk
        for c, p in enumerate(_masks4(tmax, tmin)):
            ref[0, c, pl.ds(row0, rk), :] = p.astype(ref.dtype)


# ------------------------------- wrapper --------------------------------------

def _row_sel(n_out, n_in, k):
    # (n_out, n_in) with ones at [a, k*a]: left-multiply selects every k-th row.
    a = jnp.arange(n_out)[:, None]
    c = jnp.arange(n_in)[None, :]
    return (c == k * a).astype(jnp.float32)


def _col_sel(n_in, n_out, k):
    # (n_in, n_out) with ones at [k*b, b]: right-multiply selects every k-th col.
    r = jnp.arange(n_in)[:, None]
    b = jnp.arange(n_out)[None, :]
    return (r == k * b).astype(jnp.float32)


def trimap_process(image):
    B, C, H, W = image.shape
    assert C >= 4 and H % 32 == 0 and W % 32 == 0
    dt = image.dtype
    isz = jnp.dtype(dt).itemsize

    # Rows per grid step: S = 32*TR, TR the largest divisor of H//32 whose
    # trimap strip stays <= ~1 MiB (good spot on the measured tile-size curve).
    nstrip = H // 32
    TR = 1
    for d in range(1, nstrip + 1):
        if nstrip % d == 0 and 32 * d * W * isz <= (1 << 20):
            TR = d
    S = 32 * TR
    n_r = nstrip // TR
    grid = (B, n_r)

    # Constant 0/1 selection matrices for the in-kernel compaction matmuls.
    mats = (
        _row_sel(S // 4, S - 3, 4),        _col_sel(W - 3, W // 4, 4),
        _row_sel(S // 8, S // 4 - 1, 2),   _col_sel(W // 4 - 1, W // 8, 2),
        _row_sel(S // 16, S // 8 - 1, 2),  _col_sel(W // 8 - 1, W // 16, 2),
        _row_sel(S // 32, S // 16 - 1, 2), _col_sel(W // 16 - 1, W // 32, 2),
    )
    mat_specs = [pl.BlockSpec(m.shape, lambda b, r: (0, 0)) for m in mats]

    out_shape = (
        jax.ShapeDtypeStruct((B, 2, H, W), dt),                # stage0
        jax.ShapeDtypeStruct((B, 4, H // 4, W // 4), dt),      # stage2
        jax.ShapeDtypeStruct((B, 4, H // 8, W // 8), dt),      # stage3
        jax.ShapeDtypeStruct((B, 4, H // 16, W // 16), dt),    # stage4
        jax.ShapeDtypeStruct((B, 4, H // 32, W // 32), dt),    # stage5
    )
    out_specs = (
        pl.BlockSpec((1, 2, S, W), lambda b, r: (b, 0, r, 0)),
        pl.BlockSpec((1, 4, S // 4, W // 4), lambda b, r: (b, 0, r, 0)),
        pl.BlockSpec((1, 4, H // 8, W // 8), lambda b, r: (b, 0, 0, 0)),
        pl.BlockSpec((1, 4, H // 16, W // 16), lambda b, r: (b, 0, 0, 0)),
        pl.BlockSpec((1, 4, H // 32, W // 32), lambda b, r: (b, 0, 0, 0)),
    )
    # The full NCHW image is passed; the BlockSpec picks channel 3 (trimap), so
    # no host-side slice/copy of the image is materialized.
    in_specs = [pl.BlockSpec((1, 1, S, W), lambda b, r: (b, 3, r, 0))] + mat_specs

    # VMEM budget: ~2x the summed block footprint (double buffering) plus room
    # for the windowed temporaries.  Stays well under 32 MiB for typical
    # matting resolutions (v7x only has 64 MiB physical VMEM per TensorCore).
    blk = (
        S * W * isz + 2 * S * W * isz + 4 * (S // 4) * (W // 4) * isz
        + 4 * (H // 8) * (W // 8) * isz + 4 * (H // 16) * (W // 16) * isz
        + 4 * (H // 32) * (W // 32) * isz
        + sum(int(np.prod(m.shape)) * 4 for m in mats)
    )
    vmem_limit = int(max(8 << 20, 2 * blk + 8 * S * W * 4))

    stage0, stage2, stage3, stage4, stage5 = pl.pallas_call(
        _trimap_kernel,
        out_shape=out_shape,
        grid=grid,
        in_specs=in_specs,
        out_specs=out_specs,
        compiler_params=pltpu.CompilerParams(
            # batch axis is independent (megacore-parallel on v7x); the strip
            # axis revisits the resident stage3-5 blocks, so it is arbitrary.
            dimension_semantics=("parallel", "arbitrary"),
            vmem_limit_bytes=vmem_limit,
        ),
    )(image, *mats)

    return {"stage0": stage0, "stage2": stage2, "stage3": stage3,
            "stage4": stage4, "stage5": stage5}


# ----------------------------- pure-JAX reference -----------------------------

def _ref_forward(image):
    relu = lambda v: jnp.maximum(v, 0.0)

    def mp(x, k):
        b, c, hh, ww = x.shape
        return x.reshape(b, c, hh // k, k, ww // k, k).max(axis=(3, 5))

    trimap = image[:, 3][:, None, :, :]
    F_mask = relu(trimap - 3.0 / 4.0) * 4
    B_mask = relu(1.0 / 4.0 - trimap) * 4
    tm = {}
    tm["stage2_F_large"] = mp(F_mask, 4)
    tm["stage3_F_large"] = mp(tm["stage2_F_large"], 2)
    tm["stage4_F_large"] = mp(tm["stage3_F_large"], 2)
    tm["stage5_F_large"] = mp(tm["stage4_F_large"], 2)
    tm["stage2_F_small"] = mp(1 - F_mask, 4)
    tm["stage3_F_small"] = mp(tm["stage2_F_small"], 2)
    tm["stage4_F_small"] = mp(tm["stage3_F_small"], 2)
    tm["stage5_F_small"] = mp(tm["stage4_F_small"], 2)
    for s in (2, 3, 4, 5):
        tm[f"stage{s}_F_small"] = 1 - tm[f"stage{s}_F_small"]
    tm["stage2_B_large"] = mp(B_mask, 4)
    tm["stage3_B_large"] = mp(tm["stage2_B_large"], 2)
    tm["stage4_B_large"] = mp(tm["stage3_B_large"], 2)
    tm["stage5_B_large"] = mp(tm["stage4_B_large"], 2)
    tm["stage2_B_small"] = mp(1 - B_mask, 4)
    tm["stage3_B_small"] = mp(tm["stage2_B_small"], 2)
    tm["stage4_B_small"] = mp(tm["stage3_B_small"], 2)
    tm["stage5_B_small"] = mp(tm["stage4_B_small"], 2)
    for s in (2, 3, 4, 5):
        tm[f"stage{s}_B_small"] = 1 - tm[f"stage{s}_B_small"]
    out = {"stage0": jnp.concatenate([F_mask, B_mask], axis=1)}
    for s in (2, 3, 4, 5):
        out[f"stage{s}"] = jnp.concatenate(
            [tm[f"stage{s}_F_small"], tm[f"stage{s}_F_large"],
             tm[f"stage{s}_B_small"], tm[f"stage{s}_B_large"]], axis=1)
    return out


# ----------------------------------- main --------------------------------------

if __name__ == "__main__":
    key = jax.random.PRNGKey(0)
    B, C, H, W = 2, 4, 64, 64                     # spatial must be /32 (stage5)
    image = jax.random.uniform(key, (B, C, H, W), dtype=jnp.float32)

    out = jax.jit(trimap_process)(image)
    jax.block_until_ready(out)

    ref = _ref_forward(image)
    for k in ("stage0", "stage2", "stage3", "stage4", "stage5"):
        np.testing.assert_allclose(
            np.asarray(out[k]), np.asarray(ref[k]), rtol=1e-5, atol=1e-5)

    print("KERNEL_OK")
</pallas_src>

<mosaic_0001>
module attributes {stable_mosaic.version = 11 : i64} {
  func.func @_trimap_kernel(%arg0: i32, %arg1: i32, %arg2: memref<1x1x64x64xf32, #tpu.memory_space<vmem>>, %arg3: memref<16x61xf32, #tpu.memory_space<vmem>>, %arg4: memref<61x16xf32, #tpu.memory_space<vmem>>, %arg5: memref<8x15xf32, #tpu.memory_space<vmem>>, %arg6: memref<15x8xf32, #tpu.memory_space<vmem>>, %arg7: memref<4x7xf32, #tpu.memory_space<vmem>>, %arg8: memref<7x4xf32, #tpu.memory_space<vmem>>, %arg9: memref<2x3xf32, #tpu.memory_space<vmem>>, %arg10: memref<3x2xf32, #tpu.memory_space<vmem>>, %arg11: memref<1x2x64x64xf32, #tpu.memory_space<vmem>>, %arg12: memref<1x4x16x16xf32, #tpu.memory_space<vmem>>, %arg13: memref<1x4x8x8xf32, #tpu.memory_space<vmem>>, %arg14: memref<1x4x4x4xf32, #tpu.memory_space<vmem>>, %arg15: memref<1x4x2x2xf32, #tpu.memory_space<vmem>>) attributes {dimension_semantics = [#tpu.dimension_semantics<parallel>, #tpu.dimension_semantics<arbitrary>], iteration_bounds = array<i64: 2, 1>, scalar_prefetch = 0 : i64, scratch_operands = 0 : i64, tpu.core_type = #tpu.core_type<tc>, window_params = [{transform_indices = @transform_0, window_bounds = array<i64: 1, 1, 64, 64>}, {pipeline_mode = #tpu.pipeline_mode<synchronous>, transform_indices = @transform_1, window_bounds = array<i64: 16, 61>}, {pipeline_mode = #tpu.pipeline_mode<synchronous>, transform_indices = @transform_2, window_bounds = array<i64: 61, 16>}, {pipeline_mode = #tpu.pipeline_mode<synchronous>, transform_indices = @transform_3, window_bounds = array<i64: 8, 15>}, {pipeline_mode = #tpu.pipeline_mode<synchronous>, transform_indices = @transform_4, window_bounds = array<i64: 15, 8>}, {pipeline_mode = #tpu.pipeline_mode<synchronous>, transform_indices = @transform_5, window_bounds = array<i64: 4, 7>}, {pipeline_mode = #tpu.pipeline_mode<synchronous>, transform_indices = @transform_6, window_bounds = array<i64: 7, 4>}, {pipeline_mode = #tpu.pipeline_mode<synchronous>, transform_indices = @transform_7, window_bounds = array<i64: 2, 3>}, {pipeline_mode = #tpu.pipeline_mode<synchronous>, transform_indices = @transform_8, window_bounds = array<i64: 3, 2>}, {transform_indices = @transform_9, window_bounds = array<i64: 1, 2, 64, 64>}, {transform_indices = @transform_10, window_bounds = array<i64: 1, 4, 16, 16>}, {transform_indices = @transform_11, window_bounds = array<i64: 1, 4, 8, 8>}, {transform_indices = @transform_12, window_bounds = array<i64: 1, 4, 4, 4>}, {transform_indices = @transform_13, window_bounds = array<i64: 1, 4, 2, 2>}]} {
    %c0 = arith.constant 0 : index
    %c0_0 = arith.constant 0 : index
    %c0_1 = arith.constant 0 : index
    %c0_2 = arith.constant 0 : index
    %0 = vector.load %arg2[%c0, %c0_0, %c0_1, %c0_2] : memref<1x1x64x64xf32, #tpu.memory_space<vmem>>, vector<1x1x64x64xf32>
    %1 = vector.shape_cast %0 : vector<1x1x64x64xf32> to vector<64x64xf32>
    %cst = arith.constant 7.500000e-01 : f32
    %2 = vector.broadcast %cst : f32 to vector<64x64xf32>
    %3 = arith.subf %1, %2 : vector<64x64xf32>
    %cst_3 = arith.constant 0.000000e+00 : f32
    %4 = vector.broadcast %cst_3 : f32 to vector<64x64xf32>
    %5 = arith.maximumf %3, %4 : vector<64x64xf32>
    %cst_4 = arith.constant 4.000000e+00 : f32
    %6 = vector.broadcast %cst_4 : f32 to vector<64x64xf32>
    %7 = arith.mulf %5, %6 : vector<64x64xf32>
    %c0_5 = arith.constant 0 : index
    %c0_6 = arith.constant 0 : index
    %c0_7 = arith.constant 0 : index
    %c0_8 = arith.constant 0 : index
    %8 = vector.load %arg11[%c0_5, %c0_6, %c0_7, %c0_8] : memref<1x2x64x64xf32, #tpu.memory_space<vmem>>, vector<1x1x64x64xf32>
    %9 = vector.shape_cast %8 : vector<1x1x64x64xf32> to vector<64x64xf32>
    %10 = vector.shape_cast %7 : vector<64x64xf32> to vector<1x1x64x64xf32>
    tpu.vector_store %arg11[%c0_5, %c0_6, %c0_7, %c0_8], %10 {strides = array<i32>} : memref<1x2x64x64xf32, #tpu.memory_space<vmem>>, vector<1x1x64x64xf32>,
    %cst_9 = arith.constant 2.500000e-01 : f32
    %11 = vector.broadcast %cst_9 : f32 to vector<64x64xf32>
    %12 = arith.subf %11, %1 : vector<64x64xf32>
    %cst_10 = arith.constant 0.000000e+00 : f32
    %13 = vector.broadcast %cst_10 : f32 to vector<64x64xf32>
    %14 = arith.maximumf %12, %13 : vector<64x64xf32>
    %cst_11 = arith.constant 4.000000e+00 : f32
    %15 = vector.broadcast %cst_11 : f32 to vector<64x64xf32>
    %16 = arith.mulf %14, %15 : vector<64x64xf32>
    %c0_12 = arith.constant 0 : index
    %c1 = arith.constant 1 : index
    %c0_13 = arith.constant 0 : index
    %c0_14 = arith.constant 0 : index
    %17 = vector.load %arg11[%c0_12, %c1, %c0_13, %c0_14] : memref<1x2x64x64xf32, #tpu.memory_space<vmem>>, vector<1x1x64x64xf32>
    %18 = vector.shape_cast %17 : vector<1x1x64x64xf32> to vector<64x64xf32>
    %19 = vector.shape_cast %16 : vector<64x64xf32> to vector<1x1x64x64xf32>
    tpu.vector_store %arg11[%c0_12, %c1, %c0_13, %c0_14], %19 {strides = array<i32>} : memref<1x2x64x64xf32, #tpu.memory_space<vmem>>, vector<1x1x64x64xf32>,
    %c0_15 = arith.constant 0 : index
    %c0_16 = arith.constant 0 : index
    %20 = vector.load %arg3[%c0_15, %c0_16] : memref<16x61xf32, #tpu.memory_space<vmem>>, vector<16x61xf32>
    %c0_17 = arith.constant 0 : index
    %c0_18 = arith.constant 0 : index
    %21 = vector.load %arg4[%c0_17, %c0_18] : memref<61x16xf32, #tpu.memory_space<vmem>>, vector<61x16xf32>
    %22 = vector.extract_strided_slice %1 {offsets = [0, 0], sizes = [61, 64], strides = [1, 1]} : vector<64x64xf32> to vector<61x64xf32>
    %23 = vector.extract_strided_slice %1 {offsets = [1, 0], sizes = [61, 64], strides = [1, 1]} : vector<64x64xf32> to vector<61x64xf32>
    %24 = arith.maximumf %22, %23 : vector<61x64xf32>
    %25 = arith.minimumf %22, %23 : vector<61x64xf32>
    %26 = vector.extract_strided_slice %1 {offsets = [2, 0], sizes = [61, 64], strides = [1, 1]} : vector<64x64xf32> to vector<61x64xf32>
    %27 = arith.maximumf %24, %26 : vector<61x64xf32>
    %28 = arith.minimumf %25, %26 : vector<61x64xf32>
    %29 = vector.extract_strided_slice %1 {offsets = [3, 0], sizes = [61, 64], strides = [1, 1]} : vector<64x64xf32> to vector<61x64xf32>
    %30 = arith.maximumf %27, %29 : vector<61x64xf32>
    %31 = arith.minimumf %28, %29 : vector<61x64xf32>
    %cst_19 = arith.constant dense<0.000000e+00> : vector<16x64xf32>
    %32 = tpu.matmul %20, %30, %cst_19 {dimension_numbers = #tpu.dot_dimension_numbers<[1], [0], [0], [1], [0, 0, 1, 1], [], []>, precision = #tpu.contract_precision<fp32>} : vector<16x61xf32>, vector<61x64xf32>, vector<16x64xf32> -> vector<16x64xf32>
    %cst_20 = arith.constant dense<0.000000e+00> : vector<16x64xf32>
    %33 = tpu.matmul %20, %31, %cst_20 {dimension_numbers = #tpu.dot_dimension_numbers<[1], [0], [0], [1], [0, 0, 1, 1], [], []>, precision = #tpu.contract_precision<fp32>} : vector<16x61xf32>, vector<61x64xf32>, vector<16x64xf32> -> vector<16x64xf32>
    %34 = vector.extract_strided_slice %32 {offsets = [0, 0], sizes = [16, 61], strides = [1, 1]} : vector<16x64xf32> to vector<16x61xf32>
    %35 = vector.extract_strided_slice %33 {offsets = [0, 0], sizes = [16, 61], strides = [1, 1]} : vector<16x64xf32> to vector<16x61xf32>
    %36 = vector.extract_strided_slice %32 {offsets = [0, 1], sizes = [16, 61], strides = [1, 1]} : vector<16x64xf32> to vector<16x61xf32>
    %37 = arith.maximumf %34, %36 : vector<16x61xf32>
    %38 = vector.extract_strided_slice %33 {offsets = [0, 1], sizes = [16, 61], strides = [1, 1]} : vector<16x64xf32> to vector<16x61xf32>
    %39 = arith.minimumf %35, %38 : vector<16x61xf32>
    %40 = vector.extract_strided_slice %32 {offsets = [0, 2], sizes = [16, 61], strides = [1, 1]} : vector<16x64xf32> to vector<16x61xf32>
    %41 = arith.maximumf %37, %40 : vector<16x61xf32>
    %42 = vector.extract_strided_slice %33 {offsets = [0, 2], sizes = [16, 61], strides = [1, 1]} : vector<16x64xf32> to vector<16x61xf32>
    %43 = arith.minimumf %39, %42 : vector<16x61xf32>
    %44 = vector.extract_strided_slice %32 {offsets = [0, 3], sizes = [16, 61], strides = [1, 1]} : vector<16x64xf32> to vector<16x61xf32>
    %45 = arith.maximumf %41, %44 : vector<16x61xf32>
    %46 = vector.extract_strided_slice %33 {offsets = [0, 3], sizes = [16, 61], strides = [1, 1]} : vector<16x64xf32> to vector<16x61xf32>
    %47 = arith.minimumf %43, %46 : vector<16x61xf32>
    %cst_21 = arith.constant dense<0.000000e+00> : vector<16x16xf32>
    %48 = tpu.matmul %45, %21, %cst_21 {dimension_numbers = #tpu.dot_dimension_numbers<[1], [0], [0], [1], [0, 0, 1, 1], [], []>, precision = #tpu.contract_precision<fp32>} : vector<16x61xf32>, vector<61x16xf32>, vector<16x16xf32> -> vector<16x16xf32>
    %cst_22 = arith.constant dense<0.000000e+00> : vector<16x16xf32>
    %49 = tpu.matmul %47, %21, %cst_22 {dimension_numbers = #tpu.dot_dimension_numbers<[1], [0], [0], [1], [0, 0, 1, 1], [], []>, precision = #tpu.contract_precision<fp32>} : vector<16x61xf32>, vector<61x16xf32>, vector<16x16xf32> -> vector<16x16xf32>
    %c0_23 = arith.constant 0 : index
    %c0_24 = arith.constant 0 : index
    %50 = vector.load %arg5[%c0_23, %c0_24] : memref<8x15xf32, #tpu.memory_space<vmem>>, vector<8x15xf32>
    %c0_25 = arith.constant 0 : index
    %c0_26 = arith.constant 0 : index
    %51 = vector.load %arg6[%c0_25, %c0_26] : memref<15x8xf32, #tpu.memory_space<vmem>>, vector<15x8xf32>
    %52 = vector.extract_strided_slice %48 {offsets = [0, 0], sizes = [15, 16], strides = [1, 1]} : vector<16x16xf32> to vector<15x16xf32>
    %53 = vector.extract_strided_slice %49 {offsets = [0, 0], sizes = [15, 16], strides = [1, 1]} : vector<16x16xf32> to vector<15x16xf32>
    %54 = vector.extract_strided_slice %48 {offsets = [1, 0], sizes = [15, 16], strides = [1, 1]} : vector<16x16xf32> to vector<15x16xf32>
    %55 = vector.extract_strided_slice %49 {offsets = [1, 0], sizes = [15, 16], strides = [1, 1]} : vector<16x16xf32> to vector<15x16xf32>
    %56 = arith.maximumf %52, %54 : vector<15x16xf32>
    %57 = arith.minimumf %53, %55 : vector<15x16xf32>
    %cst_27 = arith.constant dense<0.000000e+00> : vector<8x16xf32>
    %58 = tpu.matmul %50, %56, %cst_27 {dimension_numbers = #tpu.dot_dimension_numbers<[1], [0], [0], [1], [0, 0, 1, 1], [], []>, precision = #tpu.contract_precision<fp32>} : vector<8x15xf32>, vector<15x16xf32>, vector<8x16xf32> -> vector<8x16xf32>
    %cst_28 = arith.constant dense<0.000000e+00> : vector<8x16xf32>
    %59 = tpu.matmul %50, %57, %cst_28 {dimension_numbers = #tpu.dot_dimension_numbers<[1], [0], [0], [1], [0, 0, 1, 1], [], []>, precision = #tpu.contract_precision<fp32>} : vector<8x15xf32>, vector<15x16xf32>, vector<8x16xf32> -> vector<8x16xf32>
    %60 = vector.extract_strided_slice %58 {offsets = [0, 0], sizes = [8, 15], strides = [1, 1]} : vector<8x16xf32> to vector<8x15xf32>
    %61 = vector.extract_strided_slice %59 {offsets = [0, 0], sizes = [8, 15], strides = [1, 1]} : vector<8x16xf32> to vector<8x15xf32>
    %62 = vector.extract_strided_slice %58 {offsets = [0, 1], sizes = [8, 15], strides = [1, 1]} : vector<8x16xf32> to vector<8x15xf32>
    %63 = arith.maximumf %60, %62 : vector<8x15xf32>
    %64 = vector.extract_strided_slice %59 {offsets = [0, 1], sizes = [8, 15], strides = [1, 1]} : vector<8x16xf32> to vector<8x15xf32>
    %65 = arith.minimumf %61, %64 : vector<8x15xf32>
    %cst_29 = arith.constant dense<0.000000e+00> : vector<8x8xf32>
    %66 = tpu.matmul %63, %51, %cst_29 {dimension_numbers = #tpu.dot_dimension_numbers<[1], [0], [0], [1], [0, 0, 1, 1], [], []>, precision = #tpu.contract_precision<fp32>} : vector<8x15xf32>, vector<15x8xf32>, vector<8x8xf32> -> vector<8x8xf32>
    %cst_30 = arith.constant dense<0.000000e+00> : vector<8x8xf32>
    %67 = tpu.matmul %65, %51, %cst_30 {dimension_numbers = #tpu.dot_dimension_numbers<[1], [0], [0], [1], [0, 0, 1, 1], [], []>, precision = #tpu.contract_precision<fp32>} : vector<8x15xf32>, vector<15x8xf32>, vector<8x8xf32> -> vector<8x8xf32>
    %c0_31 = arith.constant 0 : index
    %c0_32 = arith.constant 0 : index
    %68 = vector.load %arg7[%c0_31, %c0_32] : memref<4x7xf32, #tpu.memory_space<vmem>>, vector<4x7xf32>
    %c0_33 = arith.constant 0 : index
    %c0_34 = arith.constant 0 : index
    %69 = vector.load %arg8[%c0_33, %c0_34] : memref<7x4xf32, #tpu.memory_space<vmem>>, vector<7x4xf32>
    %70 = vector.extract_strided_slice %66 {offsets = [0, 0], sizes = [7, 8], strides = [1, 1]} : vector<8x8xf32> to vector<7x8xf32>
    %71 = vector.extract_strided_slice %67 {offsets = [0, 0], sizes = [7, 8], strides = [1, 1]} : vector<8x8xf32> to vector<7x8xf32>
    %72 = vector.extract_strided_slice %66 {offsets = [1, 0], sizes = [7, 8], strides = [1, 1]} : vector<8x8xf32> to vector<7x8xf32>
    %73 = vector.extract_strided_slice %67 {offsets = [1, 0], sizes = [7, 8], strides = [1, 1]} : vector<8x8xf32> to vector<7x8xf32>
    %74 = arith.maximumf %70, %72 : vector<7x8xf32>
    %75 = arith.minimumf %71, %73 : vector<7x8xf32>
    %cst_35 = arith.constant dense<0.000000e+00> : vector<4x8xf32>
    %76 = tpu.matmul %68, %74, %cst_35 {dimension_numbers = #tpu.dot_dimension_numbers<[1], [0], [0], [1], [0, 0, 1, 1], [], []>, precision = #tpu.contract_precision<fp32>} : vector<4x7xf32>, vector<7x8xf32>, vector<4x8xf32> -> vector<4x8xf32>
    %cst_36 = arith.constant dense<0.000000e+00> : vector<4x8xf32>
    %77 = tpu.matmul %68, %75, %cst_36 {dimension_numbers = #tpu.dot_dimension_numbers<[1], [0], [0], [1], [0, 0, 1, 1], [], []>, precision = #tpu.contract_precision<fp32>} : vector<4x7xf32>, vector<7x8xf32>, vector<4x8xf32> -> vector<4x8xf32>
    %78 = vector.extract_strided_slice %76 {offsets = [0, 0], sizes = [4, 7], strides = [1, 1]} : vector<4x8xf32> to vector<4x7xf32>
    %79 = vector.extract_strided_slice %77 {offsets = [0, 0], sizes = [4, 7], strides = [1, 1]} : vector<4x8xf32> to vector<4x7xf32>
    %80 = vector.extract_strided_slice %76 {offsets = [0, 1], sizes = [4, 7], strides = [1, 1]} : vector<4x8xf32> to vector<4x7xf32>
    %81 = arith.maximumf %78, %80 : vector<4x7xf32>
    %82 = vector.extract_strided_slice %77 {offsets = [0, 1], sizes = [4, 7], strides = [1, 1]} : vector<4x8xf32> to vector<4x7xf32>
    %83 = arith.minimumf %79, %82 : vector<4x7xf32>
    %cst_37 = arith.constant dense<0.000000e+00> : vector<4x4xf32>
    %84 = tpu.matmul %81, %69, %cst_37 {dimension_numbers = #tpu.dot_dimension_numbers<[1], [0], [0], [1], [0, 0, 1, 1], [], []>, precision = #tpu.contract_precision<fp32>} : vector<4x7xf32>, vector<7x4xf32>, vector<4x4xf32> -> vector<4x4xf32>
    %cst_38 = arith.constant dense<0.000000e+00> : vector<4x4xf32>
    %85 = tpu.matmul %83, %69, %cst_38 {dimension_numbers = #tpu.dot_dimension_numbers<[1], [0], [0], [1], [0, 0, 1, 1], [], []>, precision = #tpu.contract_precision<fp32>} : vector<4x7xf32>, vector<7x4xf32>, vector<4x4xf32> -> vector<4x4xf32>
    %c0_39 = arith.constant 0 : index
    %c0_40 = arith.constant 0 : index
    %86 = vector.load %arg9[%c0_39, %c0_40] : memref<2x3xf32, #tpu.memory_space<vmem>>, vector<2x3xf32>
    %c0_41 = arith.constant 0 : index
    %c0_42 = arith.constant 0 : index
    %87 = vector.load %arg10[%c0_41, %c0_42] : memref<3x2xf32, #tpu.memory_space<vmem>>, vector<3x2xf32>
    %88 = vector.extract_strided_slice %84 {offsets = [0, 0], sizes = [3, 4], strides = [1, 1]} : vector<4x4xf32> to vector<3x4xf32>
    %89 = vector.extract_strided_slice %85 {offsets = [0, 0], sizes = [3, 4], strides = [1, 1]} : vector<4x4xf32> to vector<3x4xf32>
    %90 = vector.extract_strided_slice %84 {offsets = [1, 0], sizes = [3, 4], strides = [1, 1]} : vector<4x4xf32> to vector<3x4xf32>
    %91 = vector.extract_strided_slice %85 {offsets = [1, 0], sizes = [3, 4], strides = [1, 1]} : vector<4x4xf32> to vector<3x4xf32>
    %92 = arith.maximumf %88, %90 : vector<3x4xf32>
    %93 = arith.minimumf %89, %91 : vector<3x4xf32>
    %cst_43 = arith.constant dense<0.000000e+00> : vector<2x4xf32>
    %94 = tpu.matmul %86, %92, %cst_43 {dimension_numbers = #tpu.dot_dimension_numbers<[1], [0], [0], [1], [0, 0, 1, 1], [], []>, precision = #tpu.contract_precision<fp32>} : vector<2x3xf32>, vector<3x4xf32>, vector<2x4xf32> -> vector<2x4xf32>
    %cst_44 = arith.constant dense<0.000000e+00> : vector<2x4xf32>
    %95 = tpu.matmul %86, %93, %cst_44 {dimension_numbers = #tpu.dot_dimension_numbers<[1], [0], [0], [1], [0, 0, 1, 1], [], []>, precision = #tpu.contract_precision<fp32>} : vector<2x3xf32>, vector<3x4xf32>, vector<2x4xf32> -> vector<2x4xf32>
    %96 = vector.extract_strided_slice %94 {offsets = [0, 0], sizes = [2, 3], strides = [1, 1]} : vector<2x4xf32> to vector<2x3xf32>
    %97 = vector.extract_strided_slice %95 {offsets = [0, 0], sizes = [2, 3], strides = [1, 1]} : vector<2x4xf32> to vector<2x3xf32>
    %98 = vector.extract_strided_slice %94 {offsets = [0, 1], sizes = [2, 3], strides = [1, 1]} : vector<2x4xf32> to vector<2x3xf32>
    %99 = arith.maximumf %96, %98 : vector<2x3xf32>
    %100 = vector.extract_strided_slice %95 {offsets = [0, 1], sizes = [2, 3], strides = [1, 1]} : vector<2x4xf32> to vector<2x3xf32>
    %101 = arith.minimumf %97, %100 : vector<2x3xf32>
    %cst_45 = arith.constant dense<0.000000e+00> : vector<2x2xf32>
    %102 = tpu.matmul %99, %87, %cst_45 {dimension_numbers = #tpu.dot_dimension_numbers<[1], [0], [0], [1], [0, 0, 1, 1], [], []>, precision = #tpu.contract_precision<fp32>} : vector<2x3xf32>, vector<3x2xf32>, vector<2x2xf32> -> vector<2x2xf32>
    %cst_46 = arith.constant dense<0.000000e+00> : vector<2x2xf32>
    %103 = tpu.matmul %101, %87, %cst_46 {dimension_numbers = #tpu.dot_dimension_numbers<[1], [0], [0], [1], [0, 0, 1, 1], [], []>, precision = #tpu.contract_precision<fp32>} : vector<2x3xf32>, vector<3x2xf32>, vector<2x2xf32> -> vector<2x2xf32>
    %cst_47 = arith.constant 7.500000e-01 : f32
    %104 = vector.broadcast %cst_47 : f32 to vector<16x16xf32>
    %105 = arith.subf %49, %104 : vector<16x16xf32>
    %cst_48 = arith.constant 0.000000e+00 : f32
    %106 = vector.broadcast %cst_48 : f32 to vector<16x16xf32>
    %107 = arith.maximumf %105, %106 : vector<16x16xf32>
    %cst_49 = arith.constant 4.000000e+00 : f32
    %108 = vector.broadcast %cst_49 : f32 to vector<16x16xf32>
    %109 = arith.mulf %107, %108 : vector<16x16xf32>
    %cst_50 = arith.constant 7.500000e-01 : f32
    %110 = vector.broadcast %cst_50 : f32 to vector<16x16xf32>
    %111 = arith.subf %48, %110 : vector<16x16xf32>
    %cst_51 = arith.constant 0.000000e+00 : f32
    %112 = vector.broadcast %cst_51 : f32 to vector<16x16xf32>
    %113 = arith.maximumf %111, %112 : vector<16x16xf32>
    %cst_52 = arith.constant 4.000000e+00 : f32
    %114 = vector.broadcast %cst_52 : f32 to vector<16x16xf32>
    %115 = arith.mulf %113, %114 : vector<16x16xf32>
    %cst_53 = arith.constant 2.500000e-01 : f32
    %116 = vector.broadcast %cst_53 : f32 to vector<16x16xf32>
    %117 = arith.subf %116, %48 : vector<16x16xf32>
    %cst_54 = arith.constant 0.000000e+00 : f32
    %118 = vector.broadcast %cst_54 : f32 to vector<16x16xf32>
    %119 = arith.maximumf %117, %118 : vector<16x16xf32>
    %cst_55 = arith.constant 4.000000e+00 : f32
    %120 = vector.broadcast %cst_55 : f32 to vector<16x16xf32>
    %121 = arith.mulf %119, %120 : vector<16x16xf32>
    %cst_56 = arith.constant 2.500000e-01 : f32
    %122 = vector.broadcast %cst_56 : f32 to vector<16x16xf32>
    %123 = arith.subf %122, %49 : vector<16x16xf32>
    %cst_57 = arith.constant 0.000000e+00 : f32
    %124 = vector.broadcast %cst_57 : f32 to vector<16x16xf32>
    %125 = arith.maximumf %123, %124 : vector<16x16xf32>
    %cst_58 = arith.constant 4.000000e+00 : f32
    %126 = vector.broadcast %cst_58 : f32 to vector<16x16xf32>
    %127 = arith.mulf %125, %126 : vector<16x16xf32>
    %c0_59 = arith.constant 0 : index
    %c0_60 = arith.constant 0 : index
    %c0_61 = arith.constant 0 : index
    %c0_62 = arith.constant 0 : index
    %128 = vector.load %arg12[%c0_59, %c0_60, %c0_61, %c0_62] : memref<1x4x16x16xf32, #tpu.memory_space<vmem>>, vector<1x1x16x16xf32>
    %129 = vector.shape_cast %128 : vector<1x1x16x16xf32> to vector<16x16xf32>
    %130 = vector.shape_cast %109 : vector<16x16xf32> to vector<1x1x16x16xf32>
    tpu.vector_store %arg12[%c0_59, %c0_60, %c0_61, %c0_62], %130 {strides = array<i32>} : memref<1x4x16x16xf32, #tpu.memory_space<vmem>>, vector<1x1x16x16xf32>,
    %c0_63 = arith.constant 0 : index
    %c1_64 = arith.constant 1 : index
    %c0_65 = arith.constant 0 : index
    %c0_66 = arith.constant 0 : index
    %131 = vector.load %arg12[%c0_63, %c1_64, %c0_65, %c0_66] : memref<1x4x16x16xf32, #tpu.memory_space<vmem>>, vector<1x1x16x16xf32>
    %132 = vector.shape_cast %131 : vector<1x1x16x16xf32> to vector<16x16xf32>
    %133 = vector.shape_cast %115 : vector<16x16xf32> to vector<1x1x16x16xf32>
    tpu.vector_store %arg12[%c0_63, %c1_64, %c0_65, %c0_66], %133 {strides = array<i32>} : memref<1x4x16x16xf32, #tpu.memory_space<vmem>>, vector<1x1x16x16xf32>,
    %c0_67 = arith.constant 0 : index
    %c2 = arith.constant 2 : index
    %c0_68 = arith.constant 0 : index
    %c0_69 = arith.constant 0 : index
    %134 = vector.load %arg12[%c0_67, %c2, %c0_68, %c0_69] : memref<1x4x16x16xf32, #tpu.memory_space<vmem>>, vector<1x1x16x16xf32>
    %135 = vector.shape_cast %134 : vector<1x1x16x16xf32> to vector<16x16xf32>
    %136 = vector.shape_cast %121 : vector<16x16xf32> to vector<1x1x16x16xf32>
    tpu.vector_store %arg12[%c0_67, %c2, %c0_68, %c0_69], %136 {strides = array<i32>} : memref<1x4x16x16xf32, #tpu.memory_space<vmem>>, vector<1x1x16x16xf32>,
    %c0_70 = arith.constant 0 : index
    %c3 = arith.constant 3 : index
    %c0_71 = arith.constant 0 : index
    %c0_72 = arith.constant 0 : index
    %137 = vector.load %arg12[%c0_70, %c3, %c0_71, %c0_72] : memref<1x4x16x16xf32, #tpu.memory_space<vmem>>, vector<1x1x16x16xf32>
    %138 = vector.shape_cast %137 : vector<1x1x16x16xf32> to vector<16x16xf32>
    %139 = vector.shape_cast %127 : vector<16x16xf32> to vector<1x1x16x16xf32>
    tpu.vector_store %arg12[%c0_70, %c3, %c0_71, %c0_72], %139 {strides = array<i32>} : memref<1x4x16x16xf32, #tpu.memory_space<vmem>>, vector<1x1x16x16xf32>,
    %c8_i32 = arith.constant 8 : i32
    %140 = arith.muli %arg1, %c8_i32 : i32
    %cst_73 = arith.constant 7.500000e-01 : f32
    %141 = vector.broadcast %cst_73 : f32 to vector<8x8xf32>
    %142 = arith.subf %67, %141 : vector<8x8xf32>
    %cst_74 = arith.constant 0.000000e+00 : f32
    %143 = vector.broadcast %cst_74 : f32 to vector<8x8xf32>
    %144 = arith.maximumf %142, %143 : vector<8x8xf32>
    %cst_75 = arith.constant 4.000000e+00 : f32
    %145 = vector.broadcast %cst_75 : f32 to vector<8x8xf32>
    %146 = arith.mulf %144, %145 : vector<8x8xf32>
    %cst_76 = arith.constant 7.500000e-01 : f32
    %147 = vector.broadcast %cst_76 : f32 to vector<8x8xf32>
    %148 = arith.subf %66, %147 : vector<8x8xf32>
    %cst_77 = arith.constant 0.000000e+00 : f32
    %149 = vector.broadcast %cst_77 : f32 to vector<8x8xf32>
    %150 = arith.maximumf %148, %149 : vector<8x8xf32>
    %cst_78 = arith.constant 4.000000e+00 : f32
    %151 = vector.broadcast %cst_78 : f32 to vector<8x8xf32>
    %152 = arith.mulf %150, %151 : vector<8x8xf32>
    %cst_79 = arith.constant 2.500000e-01 : f32
    %153 = vector.broadcast %cst_79 : f32 to vector<8x8xf32>
    %154 = arith.subf %153, %66 : vector<8x8xf32>
    %cst_80 = arith.constant 0.000000e+00 : f32
    %155 = vector.broadcast %cst_80 : f32 to vector<8x8xf32>
    %156 = arith.maximumf %154, %155 : vector<8x8xf32>
    %cst_81 = arith.constant 4.000000e+00 : f32
    %157 = vector.broadcast %cst_81 : f32 to vector<8x8xf32>
    %158 = arith.mulf %156, %157 : vector<8x8xf32>
    %cst_82 = arith.constant 2.500000e-01 : f32
    %159 = vector.broadcast %cst_82 : f32 to vector<8x8xf32>
    %160 = arith.subf %159, %67 : vector<8x8xf32>
    %cst_83 = arith.constant 0.000000e+00 : f32
    %161 = vector.broadcast %cst_83 : f32 to vector<8x8xf32>
    %162 = arith.maximumf %160, %161 : vector<8x8xf32>
    %cst_84 = arith.constant 4.000000e+00 : f32
    %163 = vector.broadcast %cst_84 : f32 to vector<8x8xf32>
    %164 = arith.mulf %162, %163 : vector<8x8xf32>
    %c0_85 = arith.constant 0 : index
    %c0_86 = arith.constant 0 : index
    %165 = arith.index_cast %140 : i32 to index
    %c0_87 = arith.constant 0 : index
    %166 = vector.load %arg13[%c0_85, %c0_86, %165, %c0_87] : memref<1x4x8x8xf32, #tpu.memory_space<vmem>>, vector<1x1x8x8xf32>
    %167 = vector.shape_cast %166 : vector<1x1x8x8xf32> to vector<8x8xf32>
    %168 = vector.shape_cast %146 : vector<8x8xf32> to vector<1x1x8x8xf32>
    tpu.vector_store %arg13[%c0_85, %c0_86, %165, %c0_87], %168 {strides = array<i32>} : memref<1x4x8x8xf32, #tpu.memory_space<vmem>>, vector<1x1x8x8xf32>,
    %c0_88 = arith.constant 0 : index
    %c1_89 = arith.constant 1 : index
    %169 = arith.index_cast %140 : i32 to index
    %c0_90 = arith.constant 0 : index
    %170 = vector.load %arg13[%c0_88, %c1_89, %169, %c0_90] : memref<1x4x8x8xf32, #tpu.memory_space<vmem>>, vector<1x1x8x8xf32>
    %171 = vector.shape_cast %170 : vector<1x1x8x8xf32> to vector<8x8xf32>
    %172 = vector.shape_cast %152 : vector<8x8xf32> to vector<1x1x8x8xf32>
    tpu.vector_store %arg13[%c0_88, %c1_89, %169, %c0_90], %172 {strides = array<i32>} : memref<1x4x8x8xf32, #tpu.memory_space<vmem>>, vector<1x1x8x8xf32>,
    %c0_91 = arith.constant 0 : index
    %c2_92 = arith.constant 2 : index
    %173 = arith.index_cast %140 : i32 to index
    %c0_93 = arith.constant 0 : index
    %174 = vector.load %arg13[%c0_91, %c2_92, %173, %c0_93] : memref<1x4x8x8xf32, #tpu.memory_space<vmem>>, vector<1x1x8x8xf32>
    %175 = vector.shape_cast %174 : vector<1x1x8x8xf32> to vector<8x8xf32>
    %176 = vector.shape_cast %158 : vector<8x8xf32> to vector<1x1x8x8xf32>
    tpu.vector_store %arg13[%c0_91, %c2_92, %173, %c0_93], %176 {strides = array<i32>} : memref<1x4x8x8xf32, #tpu.memory_space<vmem>>, vector<1x1x8x8xf32>,
    %c0_94 = arith.constant 0 : index
    %c3_95 = arith.constant 3 : index
    %177 = arith.index_cast %140 : i32 to index
    %c0_96 = arith.constant 0 : index
    %178 = vector.load %arg13[%c0_94, %c3_95, %177, %c0_96] : memref<1x4x8x8xf32, #tpu.memory_space<vmem>>, vector<1x1x8x8xf32>
    %179 = vector.shape_cast %178 : vector<1x1x8x8xf32> to vector<8x8xf32>
    %180 = vector.shape_cast %164 : vector<8x8xf32> to vector<1x1x8x8xf32>
    tpu.vector_store %arg13[%c0_94, %c3_95, %177, %c0_96], %180 {strides = array<i32>} : memref<1x4x8x8xf32, #tpu.memory_space<vmem>>, vector<1x1x8x8xf32>,
    %c4_i32 = arith.constant 4 : i32
    %181 = arith.muli %arg1, %c4_i32 : i32
    %cst_97 = arith.constant 7.500000e-01 : f32
    %182 = vector.broadcast %cst_97 : f32 to vector<4x4xf32>
    %183 = arith.subf %85, %182 : vector<4x4xf32>
    %cst_98 = arith.constant 0.000000e+00 : f32
    %184 = vector.broadcast %cst_98 : f32 to vector<4x4xf32>
    %185 = arith.maximumf %183, %184 : vector<4x4xf32>
    %cst_99 = arith.constant 4.000000e+00 : f32
    %186 = vector.broadcast %cst_99 : f32 to vector<4x4xf32>
    %187 = arith.mulf %185, %186 : vector<4x4xf32>
    %cst_100 = arith.constant 7.500000e-01 : f32
    %188 = vector.broadcast %cst_100 : f32 to vector<4x4xf32>
    %189 = arith.subf %84, %188 : vector<4x4xf32>
    %cst_101 = arith.constant 0.000000e+00 : f32
    %190 = vector.broadcast %cst_101 : f32 to vector<4x4xf32>
    %191 = arith.maximumf %189, %190 : vector<4x4xf32>
    %cst_102 = arith.constant 4.000000e+00 : f32
    %192 = vector.broadcast %cst_102 : f32 to vector<4x4xf32>
    %193 = arith.mulf %191, %192 : vector<4x4xf32>
    %cst_103 = arith.constant 2.500000e-01 : f32
    %194 = vector.broadcast %cst_103 : f32 to vector<4x4xf32>
    %195 = arith.subf %194, %84 : vector<4x4xf32>
    %cst_104 = arith.constant 0.000000e+00 : f32
    %196 = vector.broadcast %cst_104 : f32 to vector<4x4xf32>
    %197 = arith.maximumf %195, %196 : vector<4x4xf32>
    %cst_105 = arith.constant 4.000000e+00 : f32
    %198 = vector.broadcast %cst_105 : f32 to vector<4x4xf32>
    %199 = arith.mulf %197, %198 : vector<4x4xf32>
    %cst_106 = arith.constant 2.500000e-01 : f32
    %200 = vector.broadcast %cst_106 : f32 to vector<4x4xf32>
    %201 = arith.subf %200, %85 : vector<4x4xf32>
    %cst_107 = arith.constant 0.000000e+00 : f32
    %202 = vector.broadcast %cst_107 : f32 to vector<4x4xf32>
    %203 = arith.maximumf %201, %202 : vector<4x4xf32>
    %cst_108 = arith.constant 4.000000e+00 : f32
    %204 = vector.broadcast %cst_108 : f32 to vector<4x4xf32>
    %205 = arith.mulf %203, %204 : vector<4x4xf32>
    %c0_109 = arith.constant 0 : index
    %c0_110 = arith.constant 0 : index
    %206 = arith.index_cast %181 : i32 to index
    %c0_111 = arith.constant 0 : index
    %207 = vector.load %arg14[%c0_109, %c0_110, %206, %c0_111] : memref<1x4x4x4xf32, #tpu.memory_space<vmem>>, vector<1x1x4x4xf32>
    %208 = vector.shape_cast %207 : vector<1x1x4x4xf32> to vector<4x4xf32>
    %209 = vector.shape_cast %187 : vector<4x4xf32> to vector<1x1x4x4xf32>
    tpu.vector_store %arg14[%c0_109, %c0_110, %206, %c0_111], %209 {strides = array<i32>} : memref<1x4x4x4xf32, #tpu.memory_space<vmem>>, vector<1x1x4x4xf32>,
    %c0_112 = arith.constant 0 : index
    %c1_113 = arith.constant 1 : index
    %210 = arith.index_cast %181 : i32 to index
    %c0_114 = arith.constant 0 : index
    %211 = vector.load %arg14[%c0_112, %c1_113, %210, %c0_114] : memref<1x4x4x4xf32, #tpu.memory_space<vmem>>, vector<1x1x4x4xf32>
    %212 = vector.shape_cast %211 : vector<1x1x4x4xf32> to vector<4x4xf32>
    %213 = vector.shape_cast %193 : vector<4x4xf32> to vector<1x1x4x4xf32>
    tpu.vector_store %arg14[%c0_112, %c1_113, %210, %c0_114], %213 {strides = array<i32>} : memref<1x4x4x4xf32, #tpu.memory_space<vmem>>, vector<1x1x4x4xf32>,
    %c0_115 = arith.constant 0 : index
    %c2_116 = arith.constant 2 : index
    %214 = arith.index_cast %181 : i32 to index
    %c0_117 = arith.constant 0 : index
    %215 = vector.load %arg14[%c0_115, %c2_116, %214, %c0_117] : memref<1x4x4x4xf32, #tpu.memory_space<vmem>>, vector<1x1x4x4xf32>
    %216 = vector.shape_cast %215 : vector<1x1x4x4xf32> to vector<4x4xf32>
    %217 = vector.shape_cast %199 : vector<4x4xf32> to vector<1x1x4x4xf32>
    tpu.vector_store %arg14[%c0_115, %c2_116, %214, %c0_117], %217 {strides = array<i32>} : memref<1x4x4x4xf32, #tpu.memory_space<vmem>>, vector<1x1x4x4xf32>,
    %c0_118 = arith.constant 0 : index
    %c3_119 = arith.constant 3 : index
    %218 = arith.index_cast %181 : i32 to index
    %c0_120 = arith.constant 0 : index
    %219 = vector.load %arg14[%c0_118, %c3_119, %218, %c0_120] : memref<1x4x4x4xf32, #tpu.memory_space<vmem>>, vector<1x1x4x4xf32>
    %220 = vector.shape_cast %219 : vector<1x1x4x4xf32> to vector<4x4xf32>
    %221 = vector.shape_cast %205 : vector<4x4xf32> to vector<1x1x4x4xf32>
    tpu.vector_store %arg14[%c0_118, %c3_119, %218, %c0_120], %221 {strides = array<i32>} : memref<1x4x4x4xf32, #tpu.memory_space<vmem>>, vector<1x1x4x4xf32>,
    %c2_i32 = arith.constant 2 : i32
    %222 = arith.muli %arg1, %c2_i32 : i32
    %cst_121 = arith.constant 7.500000e-01 : f32
    %223 = vector.broadcast %cst_121 : f32 to vector<2x2xf32>
    %224 = arith.subf %103, %223 : vector<2x2xf32>
    %cst_122 = arith.constant 0.000000e+00 : f32
    %225 = vector.broadcast %cst_122 : f32 to vector<2x2xf32>
    %226 = arith.maximumf %224, %225 : vector<2x2xf32>
    %cst_123 = arith.constant 4.000000e+00 : f32
    %227 = vector.broadcast %cst_123 : f32 to vector<2x2xf32>
    %228 = arith.mulf %226, %227 : vector<2x2xf32>
    %cst_124 = arith.constant 7.500000e-01 : f32
    %229 = vector.broadcast %cst_124 : f32 to vector<2x2xf32>
    %230 = arith.subf %102, %229 : vector<2x2xf32>
    %cst_125 = arith.constant 0.000000e+00 : f32
    %231 = vector.broadcast %cst_125 : f32 to vector<2x2xf32>
    %232 = arith.maximumf %230, %231 : vector<2x2xf32>
    %cst_126 = arith.constant 4.000000e+00 : f32
    %233 = vector.broadcast %cst_126 : f32 to vector<2x2xf32>
    %234 = arith.mulf %232, %233 : vector<2x2xf32>
    %cst_127 = arith.constant 2.500000e-01 : f32
    %235 = vector.broadcast %cst_127 : f32 to vector<2x2xf32>
    %236 = arith.subf %235, %102 : vector<2x2xf32>
    %cst_128 = arith.constant 0.000000e+00 : f32
    %237 = vector.broadcast %cst_128 : f32 to vector<2x2xf32>
    %238 = arith.maximumf %236, %237 : vector<2x2xf32>
    %cst_129 = arith.constant 4.000000e+00 : f32
    %239 = vector.broadcast %cst_129 : f32 to vector<2x2xf32>
    %240 = arith.mulf %238, %239 : vector<2x2xf32>
    %cst_130 = arith.constant 2.500000e-01 : f32
    %241 = vector.broadcast %cst_130 : f32 to vector<2x2xf32>
    %242 = arith.subf %241, %103 : vector<2x2xf32>
    %cst_131 = arith.constant 0.000000e+00 : f32
    %243 = vector.broadcast %cst_131 : f32 to vector<2x2xf32>
    %244 = arith.maximumf %242, %243 : vector<2x2xf32>
    %cst_132 = arith.constant 4.000000e+00 : f32
    %245 = vector.broadcast %cst_132 : f32 to vector<2x2xf32>
    %246 = arith.mulf %244, %245 : vector<2x2xf32>
    %c0_133 = arith.constant 0 : index
    %c0_134 = arith.constant 0 : index
    %247 = arith.index_cast %222 : i32 to index
    %c0_135 = arith.constant 0 : index
    %248 = vector.load %arg15[%c0_133, %c0_134, %247, %c0_135] : memref<1x4x2x2xf32, #tpu.memory_space<vmem>>, vector<1x1x2x2xf32>
    %249 = vector.shape_cast %248 : vector<1x1x2x2xf32> to vector<2x2xf32>
    %250 = vector.shape_cast %228 : vector<2x2xf32> to vector<1x1x2x2xf32>
    tpu.vector_store %arg15[%c0_133, %c0_134, %247, %c0_135], %250 {strides = array<i32>} : memref<1x4x2x2xf32, #tpu.memory_space<vmem>>, vector<1x1x2x2xf32>,
    %c0_136 = arith.constant 0 : index
    %c1_137 = arith.constant 1 : index
    %251 = arith.index_cast %222 : i32 to index
    %c0_138 = arith.constant 0 : index
    %252 = vector.load %arg15[%c0_136, %c1_137, %251, %c0_138] : memref<1x4x2x2xf32, #tpu.memory_space<vmem>>, vector<1x1x2x2xf32>
    %253 = vector.shape_cast %252 : vector<1x1x2x2xf32> to vector<2x2xf32>
    %254 = vector.shape_cast %234 : vector<2x2xf32> to vector<1x1x2x2xf32>
    tpu.vector_store %arg15[%c0_136, %c1_137, %251, %c0_138], %254 {strides = array<i32>} : memref<1x4x2x2xf32, #tpu.memory_space<vmem>>, vector<1x1x2x2xf32>,
    %c0_139 = arith.constant 0 : index
    %c2_140 = arith.constant 2 : index
    %255 = arith.index_cast %222 : i32 to index
    %c0_141 = arith.constant 0 : index
    %256 = vector.load %arg15[%c0_139, %c2_140, %255, %c0_141] : memref<1x4x2x2xf32, #tpu.memory_space<vmem>>, vector<1x1x2x2xf32>
    %257 = vector.shape_cast %256 : vector<1x1x2x2xf32> to vector<2x2xf32>
    %258 = vector.shape_cast %240 : vector<2x2xf32> to vector<1x1x2x2xf32>
    tpu.vector_store %arg15[%c0_139, %c2_140, %255, %c0_141], %258 {strides = array<i32>} : memref<1x4x2x2xf32, #tpu.memory_space<vmem>>, vector<1x1x2x2xf32>,
    %c0_142 = arith.constant 0 : index
    %c3_143 = arith.constant 3 : index
    %259 = arith.index_cast %222 : i32 to index
    %c0_144 = arith.constant 0 : index
    %260 = vector.load %arg15[%c0_142, %c3_143, %259, %c0_144] : memref<1x4x2x2xf32, #tpu.memory_space<vmem>>, vector<1x1x2x2xf32>
    %261 = vector.shape_cast %260 : vector<1x1x2x2xf32> to vector<2x2xf32>
    %262 = vector.shape_cast %246 : vector<2x2xf32> to vector<1x1x2x2xf32>
    tpu.vector_store %arg15[%c0_142, %c3_143, %259, %c0_144], %262 {strides = array<i32>} : memref<1x4x2x2xf32, #tpu.memory_space<vmem>>, vector<1x1x2x2xf32>,
    return
  }
  func.func @transform_0(%arg0: i32, %arg1: i32) -> (i32, i32, i32, i32) {
    %c3_i32 = arith.constant 3 : i32
    %c0_i32 = arith.constant 0 : i32
    %c0_i32_0 = arith.constant 0 : i32
    return %arg0, %c3_i32, %arg1, %c0_i32 : i32, i32, i32, i32
  }
  func.func @transform_1(%arg0: i32, %arg1: i32) -> (i32, i32) {
    %c0_i32 = arith.constant 0 : i32
    %c0_i32_0 = arith.constant 0 : i32
    %c0_i32_1 = arith.constant 0 : i32
    return %c0_i32, %c0_i32_0 : i32, i32
  }
  func.func @transform_2(%arg0: i32, %arg1: i32) -> (i32, i32) {
    %c0_i32 = arith.constant 0 : i32
    %c0_i32_0 = arith.constant 0 : i32
    %c0_i32_1 = arith.constant 0 : i32
    return %c0_i32, %c0_i32_0 : i32, i32
  }
  func.func @transform_3(%arg0: i32, %arg1: i32) -> (i32, i32) {
    %c0_i32 = arith.constant 0 : i32
    %c0_i32_0 = arith.constant 0 : i32
    %c0_i32_1 = arith.constant 0 : i32
    return %c0_i32, %c0_i32_0 : i32, i32
  }
  func.func @transform_4(%arg0: i32, %arg1: i32) -> (i32, i32) {
    %c0_i32 = arith.constant 0 : i32
    %c0_i32_0 = arith.constant 0 : i32
    %c0_i32_1 = arith.constant 0 : i32
    return %c0_i32, %c0_i32_0 : i32, i32
  }
  func.func @transform_5(%arg0: i32, %arg1: i32) -> (i32, i32) {
    %c0_i32 = arith.constant 0 : i32
    %c0_i32_0 = arith.constant 0 : i32
    %c0_i32_1 = arith.constant 0 : i32
    return %c0_i32, %c0_i32_0 : i32, i32
  }
  func.func @transform_6(%arg0: i32, %arg1: i32) -> (i32, i32) {
    %c0_i32 = arith.constant 0 : i32
    %c0_i32_0 = arith.constant 0 : i32
    %c0_i32_1 = arith.constant 0 : i32
    return %c0_i32, %c0_i32_0 : i32, i32
  }
  func.func @transform_7(%arg0: i32, %arg1: i32) -> (i32, i32) {
    %c0_i32 = arith.constant 0 : i32
    %c0_i32_0 = arith.constant 0 : i32
    %c0_i32_1 = arith.constant 0 : i32
    return %c0_i32, %c0_i32_0 : i32, i32
  }
  func.func @transform_8(%arg0: i32, %arg1: i32) -> (i32, i32) {
    %c0_i32 = arith.constant 0 : i32
    %c0_i32_0 = arith.constant 0 : i32
    %c0_i32_1 = arith.constant 0 : i32
    return %c0_i32, %c0_i32_0 : i32, i32
  }
  func.func @transform_9(%arg0: i32, %arg1: i32) -> (i32, i32, i32, i32) {
    %c0_i32 = arith.constant 0 : i32
    %c0_i32_0 = arith.constant 0 : i32
    %c0_i32_1 = arith.constant 0 : i32
    return %arg0, %c0_i32, %arg1, %c0_i32_0 : i32, i32, i32, i32
  }
  func.func @transform_10(%arg0: i32, %arg1: i32) -> (i32, i32, i32, i32) {
    %c0_i32 = arith.constant 0 : i32
    %c0_i32_0 = arith.constant 0 : i32
    %c0_i32_1 = arith.constant 0 : i32
    return %arg0, %c0_i32, %arg1, %c0_i32_0 : i32, i32, i32, i32
  }
  func.func @transform_11(%arg0: i32, %arg1: i32) -> (i32, i32, i32, i32) {
    %c0_i32 = arith.constant 0 : i32
    %c0_i32_0 = arith.constant 0 : i32
    %c0_i32_1 = arith.constant 0 : i32
    %c0_i32_2 = arith.constant 0 : i32
    return %arg0, %c0_i32, %c0_i32_0, %c0_i32_1 : i32, i32, i32, i32
  }
  func.func @transform_12(%arg0: i32, %arg1: i32) -> (i32, i32, i32, i32) {
    %c0_i32 = arith.constant 0 : i32
    %c0_i32_0 = arith.constant 0 : i32
    %c0_i32_1 = arith.constant 0 : i32
    %c0_i32_2 = arith.constant 0 : i32
    return %arg0, %c0_i32, %c0_i32_0, %c0_i32_1 : i32, i32, i32, i32
  }
  func.func @transform_13(%arg0: i32, %arg1: i32) -> (i32, i32, i32, i32) {
    %c0_i32 = arith.constant 0 : i32
    %c0_i32_0 = arith.constant 0 : i32
    %c0_i32_1 = arith.constant 0 : i32
    %c0_i32_2 = arith.constant 0 : i32
    return %arg0, %c0_i32, %c0_i32_0, %c0_i32_1 : i32, i32, i32, i32
  }
}

</mosaic_0001>

<bundles_post_ra>
// kernel: trimap_process.1
= control target key start
LH: loop header
LB: loop body
LE: loop exit
PB: predicated region body
PF: predicated region fallthrough
CT: control target
= control target key end

     0   :  { %s5823_s0 = inlined_call_operand.hbm [shape: f32[2,4,64,64], index: 0, kind: input, shape index: {}]   ;;  %s5824_s1 = inlined_call_operand.vmem [shape: f32[16,61], index: 1, kind: input, shape index: {}]   ;;  %s5825_s2 = inlined_call_operand.vmem [shape: f32[61,16], index: 2, kind: input, shape index: {}]   ;;  %s5826_s3 = inlined_call_operand.vmem [shape: f32[8,15], index: 3, kind: input, shape index: {}]   ;;  %s5827_s4 = inlined_call_operand.vmem [shape: f32[15,8], index: 4, kind: input, shape index: {}]   ;;  %s5828_s5 = inlined_call_operand.vmem [shape: f32[4,7], index: 5, kind: input, shape index: {}]   ;;  %s5829_s6 = inlined_call_operand.vmem [shape: f32[7,4], index: 6, kind: input, shape index: {}]   ;;  %s5830_s7 = inlined_call_operand.vmem [shape: f32[2,3], index: 7, kind: input, shape index: {}]   ;;  %s5831_s8 = inlined_call_operand.vmem [shape: f32[3,2], index: 8, kind: input, shape index: {}]   ;;  %s5832_s9 = inlined_call_operand.hbm [shape: f32[2,2,64,64], index: 9, kind: output, shape index: {0}]   ;;  %s5833_s10 = inlined_call_operand.hbm [shape: f32[2,4,16,16], index: 10, kind: output, shape index: {1}]   ;;  %s5834_s11 = inlined_call_operand.hbm [shape: f32[2,4,8,8], index: 11, kind: output, shape index: {2}]   ;;  %s5835_s12 = inlined_call_operand.hbm [shape: f32[2,4,4,4], index: 12, kind: output, shape index: {3}]   ;;  %s5836_s13 = inlined_call_operand.vmem [shape: f32[2,4,2,2], index: 13, kind: output, shape index: {4}]  }
   0x1   :  { %5850 = sst [smem:[#allocation19_spill]] %s5823_s0 }
   0x2   :  { %5851 = sst [smem:[#allocation20_spill]] %s5824_s1 }
   0x3   :  { %5852 = sst [smem:[#allocation21_spill]] %s5825_s2 }
   0x4   :  { %5853 = sst [smem:[#allocation22_spill]] %s5826_s3 }
   0x5   :  { %5854 = sst [smem:[#allocation23_spill]] %s5827_s4 }
   0x6   :  { %5855 = sst [smem:[#allocation24_spill]] %s5828_s5 }
   0x7   :  { %5856 = sst [smem:[#allocation25_spill]] %s5832_s9 }
   0x8   :  { %5857 = sst [smem:[#allocation26_spill]] %s5833_s10 }
   0x9   :  { %5858 = sst [smem:[#allocation27_spill]] %s5834_s11 }
   0xa   :  { %5859 = sst [smem:[#allocation28_spill]] %s5835_s12 }
   0xb   :  { %5860 = sst [smem:[#allocation29_spill]] %s5836_s13 }
   0xc   :  { %19 = vsyncpa [#allocation3], 0 }
   0xd   :  { %21 = vsyncpa [#allocation3 + $0x1], 0 }
   0xe   :  { %22 = vsyncpa [#allocation4], 0 }
   0xf   :  { %24 = vsyncpa [#allocation4 + $0x1], 0 }
  0x10   :  { %25 = vsyncpa [#allocation7], 0 }
  0x11   :  { %27 = vsyncpa [#allocation7 + $0x1], 0 }
  0x12   :  { %28 = vsyncpa [#allocation10], 0 }
  0x13   :  { %30 = vsyncpa [#allocation10 + $0x1], 0  ;;  %s4719_s25 = smov 0   ;;  %s4721_s26 = smov 0  }
  0x14   :  { %s4723_s27 = smov 0   ;;  %s4725_s28 = smov 0  }
  0x15   :  { %s4727_s29 = smov 0   ;;  %s4729_s30 = smov 0  }
  0x16 LB: > { %5861 = sst [smem:[#allocation15_spill]] %s4618_s25  ;;  %s4750_s14 = sadd.s32 4294967295, %s4638_s30   ;;  %s4638_s30 = sphi %s4729_s30, %s36_s30   ;;  %s4634_s29 = sphi %s4727_s29, %s5893_s29   ;;  %s4630_s28 = sphi %s4725_s28, %s5892_s28   ;;  %s4626_s27 = sphi %s4723_s27, %s5891_s27   ;;  %s4622_s26 = sphi %s4721_s26, %s5890_s26   ;;  %s4618_s25 = sphi %s4719_s25, %s5889_s25  }
  0x17   : > { %s5842_s15 = sadd.s32 4294967294, %s4638_s30   ;;  %s48_s16 = sadd.s32 1, %s4634_s29 }
  0x18   : > { %s57_s17 = sadd.s32 1, %s4626_s27  ;;  %p50_p0 = scmp.ge.s32.totalorder %s48_s16, 2 }
  0x19   : > { %p64_p1 = scmp.ne.s32.totalorder %s4626_s27, %s4622_s26  ;;  %p65_p2 = scmp.eq.s32.totalorder %s4638_s30, 0 }
  0x1a   : > { %p70_p3 = scmp.ne.s32.totalorder %s4622_s26, %s4618_s25  ;;  %s5895_s16 = smov (%p50_p0, %s48_s16), 0 }
  0x1b   : > { %5862 = sst [smem:[#allocation16_spill]] %s5895_s16  ;;  %p4762_p4 = por %p65_p2, %p64_p1 }
  0x1c   : > { %p71_p5 = scmp.eq.s32.totalorder %s4750_s14, 0  ;;  %s52_s19 = ssub.s32 %s4634_s29, %s5895_s16 }
  0x1d   : > { %p264_p6 = scmp.eq.s32.totalorder %s4750_s14, 1  ;;  %p55_p7 = scmp.eq.s32.totalorder %s52_s19, 0 }
  0x1e   : > { %p4770_p8 = por %p71_p5, %p70_p3  ;;  %p270_p10 = scmp.eq.s32.totalorder %s5842_s15, 1 }
  0x1f   : > { %p4774_p9 = por %p264_p6, %p64_p1  ;;  %p4275_p12 = scmp.ge.s32.totalorder %s4638_s30, 2 }
  0x20   : > { %s4781_s22 = scalar_select %p55_p7, %s4626_s27, %s57_s17  }
  0x21   : > { %p4783_p11 = por %p270_p10, %p70_p3  ;;  %p4375_p13 = scmp.lt.s32.totalorder %s4638_s30, 2 }
  0x22   : > { %5866 = sst [smem:[#allocation17_spill]] %s4781_s22  ;;  %s420_s24 = sand.u32 1, %s4626_s27  }
  0x23   : > { %s5867_s23 = scalar_select %p4783_p11, 1, 0 }
  0x24   : > { %s4276_s19 = sshll.u32 %s420_s24, 6  ;;  %s4342_s16 = sshll.u32 %s4634_s29, 8 }
  0x25   : > { %5868 = sst [smem:[#allocation18_spill]] %s5867_s23  ;;  %s424_s11 = scalar_lea.vmem [#allocation2], %s4276_s19 }
  0x26   : > { %s5869_s0 = sld [smem:[#allocation19_spill]]  ;;  %s435_s9 = sshll.u32 %s424_s11, 4  ;;  %s436_s9 = int_to_ptr.vmem [resolvable:$true] %s435_s9 }
  0x27   : > { %p4359_p0 = pnand %p4375_p13, %p4762_p4  ;;  %s421_s22 = scalar_lea.sflag [#allocation3], %s420_s24 }
  0x28   : > { %s4640_s23 = smov 128   ;;  %s4641_s10 = smov 8  }
  0x29   : > { %p4279_p1 = scmp.ge.s32.totalorder %s4638_s30, 1  ;;  %p443_p2 = scmp.lt.s32.totalorder %s4638_s30, 3 }
  0x2b   : > { %p444_p3 = pnand %p4279_p1, %p443_p2 }
  0x2c   : > { %s4105_s12 = scalar_lea.hbm %s5869_s0, %s4342_s16  ;;  %s4799_s13 = sand.u32 (!%p444_p3), 1, %s4622_s26  }
  0x2d   : > { %s4106_s15 = scalar_lea.hbm %s4105_s12, 192  ;;  %447 = sbr.rel (%p444_p3) target bundleno = 1843 (0x733), region = 56 }
  0x2e   : > { %s433_s17 = sshll.u32 %s4106_s15, 4  ;;  %s4280_s11 = sshll.u32 (!%p444_p3), %s4799_s13, 6  ;;  %s434_s17 = int_to_ptr.hbm [resolvable:$true] %s433_s17 }
  0x2f   : > { %4361 = dma.hbm_to_vmem [thread:$0]  (!%p4359_p0), %s434_s17, 1024, %s436_s9, %s421_s22, %s4640_s23, %s4640_s23, %s4641_s10  }
  0x30   : > { %s450_s12 = scalar_lea.sflag (!%p444_p3), [#allocation3], %s4799_s13  ;;  %s4805_s25 = scalar_lea.vmem (!%p444_p3), [#allocation2], %s4280_s11 }
  0x32   : > { %4601 = dma.done.wait (%p4770_p8), %s450_s12, 1024  }
  0x33   : > { %4603 = vsyncadd (%p4770_p8), %s450_s12, 4294966272  ;;  %v4812_v0 = vld [vmem:[%s4805_s25 + $0x38] sm:$0xff]  ;;  %vm557_vm0 = vcmask 523264   ;;  %vm697_vm1 = vcmask 1044480   ;;  %v4815_v1 = vld [vmem:[%s4805_s25 + $0x30] sm:$0xff]  ;;  %vm617_vm2 = vcmask 1046528  }
  0x34   : > { %vm657_vm3 = vcmask 1045504   ;;  %s4281_s9 = sshll.u32 %s4799_s13, 7  ;;  %v4294_v2 = vadd.f32 -0.75, %v4812_v0  ;;  %v573_v3 = vsub.f32 0.25, %v4812_v0  ;;  %v4821_v4 = vrot.slane %v4812_v0, 1  ;;  %v4844_v22 = vld [vmem:[%s4805_s25 + $0x28] sm:$0xff] }
  0x35   : > { %v4824_v5 = vrot.slane %v4812_v0, 2  ;;  %v4827_v6 = vrot.slane %v4812_v0, 3  ;;  %v4293_v7 = vadd.f32 -0.75, %v4815_v1  ;;  %v572_v8 = vsub.f32 0.25, %v4815_v1  ;;  %s4854_s10 = scalar_lea.vmem [#allocation5], %s4281_s9  ;;  %v4863_v31 = vld [vmem:[%s4805_s25 + $0x20] sm:$0xff] }
  0x36   : > { %v629_v9 = vrot.slane %v4815_v1, 1  ;;  %v548_v10 = vmax.f32 %v4294_v2, 0.0  ;;  %v581_v11 = vmax.f32 %v573_v3, 0.0  ;;  %v648_v12 = vmax.f32 %v4812_v0, %v4821_v4  ;;  %v4908_v56 = vld [vmem:[%s4805_s25 + $0x18] sm:$0xff]  ;;  %s5870_s1 = sld [smem:[#allocation20_spill]]  ;;  %s4642_s22 = smov 125  }
  0x37   : > { %v669_v13 = vrot.slane %v4815_v1, 2  ;;  %v547_v14 = vmax.f32 %v4293_v7, 0.0  ;;  %v580_v15 = vmax.f32 %v572_v8, 0.0  ;;  %v709_v17 = vrot.slane %v4815_v1, 3  ;;  %s4643_s23 = smov 127   ;;  %s4644_s24 = smov 126  }
  0x38   : > { %v4837_v16 = vsel %vm617_vm2, %v629_v9, %v4821_v4  ;;  %v556_v18 = vmul.f32 4.0, %v548_v10  ;;  %v589_v19 = vmul.f32 4.0, %v581_v11  ;;  %v688_v20 = vmax.f32 %v648_v12, %v4824_v5  ;;  %s5875_s2 = sld [smem:[#allocation21_spill]]  ;;  %s5570_s18 = scalar_lea.vmem [#allocation6], %s4280_s11 }
  0x39   : > { %v647_v21 = vmax.f32 %v4815_v1, %v4837_v16  ;;  %v555_v23 = vmul.f32 4.0, %v547_v14  ;;  %v588_v24 = vmul.f32 4.0, %v580_v15  ;;  %v4848_v25 = vsel %vm657_vm3, %v669_v13, %v4824_v5  ;;  %s5876_s3 = sld [smem:[#allocation22_spill]]  ;;  %s4283_s12 = sshll.u32 %s4799_s13, 5 }
  0x3a   : > { %v4852_v26 = vsel %vm697_vm1, %v709_v17, %v4827_v6  ;;  %565 = vst.msk [vmem:[%s4854_s10 + $0x38] sm:$0xff] %vm557_vm0, %v556_v18  ;;  %v728_v27 = vmax.f32 %v688_v20, %v4827_v6  ;;  %v4292_v29 = vadd.f32 -0.75, %v4844_v22  ;;  %v571_v30 = vsub.f32 0.25, %v4844_v22  ;;  %s5877_s4 = sld [smem:[#allocation23_spill]]  ;;  %s4284_s20 = sshll.u32 %s4799_s13, 4 }
  0x3b   : > { %v687_v28 = vmax.f32 %v647_v21, %v4848_v25  ;;  %4302 = vst.msk [vmem:[%s4854_s10 + $0x78] sm:$0xff] %vm557_vm0, %v589_v19  ;;  %v627_v32 = vrot.slane %v4844_v22, 1  ;;  %v667_v33 = vrot.slane %v4844_v22, 2  ;;  %v707_v34 = vrot.slane %v4844_v22, 3  ;;  %v4945_v19 = vld [vmem:[%s4805_s25 + $0x10] sm:$0xff]  ;;  %s5878_s5 = sld [smem:[#allocation24_spill]] }
  0x3c   : > { %v4291_v35 = vadd.f32 -0.75, %v4863_v31  ;;  %v745_v36 = vsel %vm697_vm1, %v728_v27, 0  ;;  %564 = vst.msk [vmem:[%s4854_s10 + $0x30] sm:$0xff] %vm557_vm0, %v555_v23  ;;  %v546_v38 = vmax.f32 %v4292_v29, 0.0  ;;  %v579_v39 = vmax.f32 %v571_v30, 0.0  ;;  %s5879_s9 = sld [smem:[#allocation26_spill]] }
  0x3d   : > { %v727_v37 = vmax.f32 %v687_v28, %v4852_v26  ;;  %v4875_v40 = vand.u32 4294901760, %v745_v36  ;;  %4301 = vst.msk [vmem:[%s4854_s10 + $0x70] sm:$0xff] %vm557_vm0, %v588_v24  ;;  %v4880_v41 = vsel %vm617_vm2, %v627_v32, %v629_v9  ;;  %v4883_v42 = vsel %vm657_vm3, %v667_v33, %v669_v13  ;;  %s4344_s16 = sshll.u32 %s4630_s28, 7  ;;  %s3938_s11 = sand.u32 1, %s4750_s14  }
  0x3e   : > { %v4886_v43 = vsel %vm697_vm1, %v707_v34, %v709_v17  ;;  %v554_v45 = vmul.f32 4.0, %v546_v38  ;;  %v587_v46 = vmul.f32 4.0, %v579_v39  ;;  %v646_v47 = vmax.f32 %v4844_v22, %v4880_v41 }
  0x3f   : > { %v4888_v44 = vand.u32 4294901760, %v727_v37  ;;  %756 = vmatpush.msra.mxu0 %v4875_v40  ;;  %v4894_v48 = vsub.f32 %v745_v36, %v4875_v40  ;;  %905 = vmatpush.msra.mxu3 %v4875_v40  ;;  %v545_v49 = vmax.f32 %v4291_v35, 0.0  ;;  %v570_v50 = vsub.f32 0.25, %v4863_v31 }
  0x40   : > { %v625_v51 = vrot.slane %v4863_v31, 1  ;;  %563 = vst.msk [vmem:[%s4854_s10 + $0x28] sm:$0xff] %vm557_vm0, %v554_v45  ;;  %v686_v52 = vmax.f32 %v646_v47, %v4883_v42  ;;  %v665_v53 = vrot.slane %v4863_v31, 2  ;;  %v705_v54 = vrot.slane %v4863_v31, 3 }
  0x41   : > { %v4905_v55 = vsub.f32 %v727_v37, %v4888_v44  ;;  %758 = vmatpush.msra.mxu0 %v4888_v44  ;;  %4300 = vst.msk [vmem:[%s4854_s10 + $0x68] sm:$0xff] %vm557_vm0, %v587_v46  ;;  %863 = vmatpush.msra.mxu2 %v4894_v48  ;;  %v553_v57 = vmul.f32 4.0, %v545_v49  ;;  %v578_v58 = vmax.f32 %v570_v50, 0.0  ;;  %v4290_v60 = vadd.f32 -0.75, %v4908_v56  ;;  %v4985_v50 = vld [vmem:[%s4805_s25 + $0x8] sm:$0xff] }
  0x42   : > { %v4915_v59 = vsel %vm617_vm2, %v625_v51, %v627_v32  ;;  %v726_v61 = vmax.f32 %v686_v52, %v4886_v43  ;;  %v4922_v63 = vsel %vm657_vm3, %v665_v53, %v667_v33  ;;  %v4925_v2 = vsel %vm697_vm1, %v705_v54, %v707_v34  ;;  %907 = vmatpush.msra.mxu3 %v4888_v44  ;;  %s4484_s14 = scalar_lea.hbm %s5879_s9, 128 }
  0x43   : > { %v645_v62 = vmax.f32 %v4863_v31, %v4915_v59  ;;  %562 = vst.msk [vmem:[%s4854_s10 + $0x20] sm:$0xff] %vm557_vm0, %v553_v57  ;;  %v586_v3 = vmul.f32 4.0, %v578_v58  ;;  %866 = vmatpush.msra.mxu2 %v4905_v55  ;;  %v544_v7 = vmax.f32 %v4290_v60, 0.0  ;;  %v569_v8 = vsub.f32 0.25, %v4908_v56 }
  0x44   : > { %v623_v9 = vrot.slane %v4908_v56, 1  ;;  %v4933_v10 = vand.u32 4294901760, %v726_v61  ;;  %v663_v12 = vrot.slane %v4908_v56, 2  ;;  %v703_v13 = vrot.slane %v4908_v56, 3 }
  0x45   : > { %v685_v11 = vmax.f32 %v645_v62, %v4922_v63  ;;  %4299 = vst.msk [vmem:[%s4854_s10 + $0x60] sm:$0xff] %vm557_vm0, %v586_v3  ;;  %v552_v14 = vmul.f32 4.0, %v544_v7  ;;  %v577_v15 = vmax.f32 %v569_v8, 0.0  ;;  %v798_v18 = vand.u32 4294901760, %v4894_v48 }
  0x46   : > { %v4941_v17 = vsel %vm617_vm2, %v623_v9, %v625_v51  ;;  %760 = vmatpush.msra.mxu0 %v4933_v10  ;;  %v4952_v23 = vsel %vm657_vm3, %v663_v12, %v665_v53  ;;  %v4955_v24 = vsel %vm697_vm1, %v703_v13, %v705_v54  ;;  %v4963_v29 = vsub.f32 %v726_v61, %v4933_v10 }
  0x47   : > { %v725_v20 = vmax.f32 %v685_v11, %v4925_v2  ;;  %v644_v21 = vmax.f32 %v4908_v56, %v4941_v17  ;;  %561 = vst.msk [vmem:[%s4854_s10 + $0x18] sm:$0xff] %vm557_vm0, %v552_v14  ;;  %v585_v27 = vmul.f32 4.0, %v577_v15  ;;  %v799_v28 = vsub.f32 %v4894_v48, %v798_v18  ;;  %909 = vmatpush.msra.mxu3 %v4933_v10 }
  0x48   : > { %v4289_v30 = vadd.f32 -0.75, %v4945_v19  ;;  %v568_v34 = vsub.f32 0.25, %v4945_v19  ;;  %v621_v35 = vrot.slane %v4945_v19, 1  ;;  %869 = vmatpush.msra.mxu2 %v4963_v29  ;;  %v661_v38 = vrot.slane %v4945_v19, 2 }
  0x49   : > { %v4967_v32 = vand.u32 4294901760, %v725_v20  ;;  %v684_v33 = vmax.f32 %v644_v21, %v4952_v23  ;;  %4298 = vst.msk [vmem:[%s4854_s10 + $0x58] sm:$0xff] %vm557_vm0, %v585_v27  ;;  %v800_v36 = vand.u32 4294901760, %v799_v28  ;;  %v701_v39 = vrot.slane %v4945_v19, 3 }
  0x4a   : > { %v543_v37 = vmax.f32 %v4289_v30, 0.0  ;;  %v576_v46 = vmax.f32 %v568_v34, 0.0  ;;  %v4980_v47 = vsel %vm617_vm2, %v621_v35, %v623_v9  ;;  %v804_v49 = vand.u32 4294901760, %v4905_v55  ;;  %v5033_v34 = vld [vmem:[%s4805_s25] sm:$0xff]  ;;  %s5632_s25 = scalar_lea.vmem [#allocation8], %s4283_s12 }
  0x4b   : > { %762 = vmatpush.msra.mxu0 %v4967_v32  ;;  %v724_v45 = vmax.f32 %v684_v33, %v4955_v24  ;;  %911 = vmatpush.msra.mxu3 %v4967_v32  ;;  %v643_v52 = vmax.f32 %v4945_v19, %v4980_v47  ;;  %v4990_v53 = vsel %vm657_vm3, %v661_v38, %v663_v12  ;;  %vm737_vm4 = vcmask 498688  }
  0x4c   : > { %801 = vmatpush.msra.mxu1 %v800_v36  ;;  %v551_v51 = vmul.f32 4.0, %v543_v37  ;;  %v4993_v54 = vsel %vm697_vm1, %v701_v39, %v703_v13  ;;  %v584_v58 = vmul.f32 4.0, %v576_v46  ;;  %v805_v60 = vsub.f32 %v4905_v55, %v804_v49 }
  0x4d   : > { %v4995_v57 = vand.u32 4294901760, %v724_v45  ;;  %v5001_v61 = vsub.f32 %v725_v20, %v4967_v32  ;;  %v683_v62 = vmax.f32 %v643_v52, %v4990_v53  ;;  %v4288_v3 = vadd.f32 -0.75, %v4985_v50 }
  0x4e   : > { %560 = vst.msk [vmem:[%s4854_s10 + $0x10] sm:$0xff] %vm557_vm0, %v551_v51  ;;  %v567_v7 = vsub.f32 0.25, %v4985_v50  ;;  %v619_v8 = vrot.slane %v4985_v50, 1  ;;  %v806_v9 = vand.u32 4294901760, %v805_v60  ;;  %v659_v11 = vrot.slane %v4985_v50, 2 }
  0x4f   : > { %764 = vmatpush.msra.mxu0 %v4995_v57  ;;  %4297 = vst.msk [vmem:[%s4854_s10 + $0x50] sm:$0xff] %vm557_vm0, %v584_v58  ;;  %872 = vmatpush.msra.mxu2 %v5001_v61  ;;  %v699_v12 = vrot.slane %v4985_v50, 3  ;;  %v5848_v13 = vand.u32 4294901760, %v4963_v29  ;;  %v723_v14 = vmax.f32 %v683_v62, %v4993_v54  ;;  %v542_v15 = vmax.f32 %v4288_v3, 0.0 }
  0x50   : > { %v575_v20 = vmax.f32 %v567_v7, 0.0  ;;  %v5018_v21 = vsel %vm617_vm2, %v619_v8, %v621_v35  ;;  %913 = vmatpush.msra.mxu3 %v4995_v57  ;;  %807 = vmatpush.msra.mxu1 %v806_v9  ;;  %v5024_v28 = vsel %vm657_vm3, %v659_v11, %v661_v38  ;;  %v5038_v46 = vsub.f32 %v724_v45, %v4995_v57 }
  0x51   : > { %v642_v27 = vmax.f32 %v4985_v50, %v5018_v21  ;;  %v5027_v30 = vsel %vm697_vm1, %v699_v12, %v701_v39  ;;  %v811_v33 = vsub.f32 %v4963_v29, %v5848_v13  ;;  %v5035_v35 = vand.u32 4294901760, %v723_v14 }
  0x52   : > { %v550_v36 = vmul.f32 4.0, %v542_v15  ;;  %v583_v37 = vmul.f32 4.0, %v575_v20  ;;  %v4287_v39 = vadd.f32 -0.75, %v5033_v34  ;;  %v566_v52 = vsub.f32 0.25, %v5033_v34  ;;  %875 = vmatpush.msra.mxu2 %v5038_v46  ;;  %v599_v20 = vld [vmem:[%s5870_s1] sm:$0xff] }
  0x53   : > { %v682_v38 = vmax.f32 %v642_v27, %v5024_v28  ;;  %v812_v51 = vand.u32 4294901760, %v811_v33  ;;  %766 = vmatpush.msra.mxu0 %v5035_v35  ;;  %v618_v58 = vrot.slane %v5033_v34, 1  ;;  %v658_v60 = vrot.slane %v5033_v34, 2  ;;  %915 = vmatpush.msra.mxu3 %v5035_v35 }
  0x54   : > { %559 = vst.msk [vmem:[%s4854_s10 + $0x8] sm:$0xff] %vm557_vm0, %v550_v36  ;;  %v698_v45 = vrot.slane %v5033_v34, 3  ;;  %v5846_v62 = vand.u32 4294901760, %v5001_v61  ;;  %v541_v7 = vmax.f32 %v4287_v39, 0.0  ;;  %v574_v9 = vmax.f32 %v566_v52, 0.0 }
  0x55   : > { %4296 = vst.msk [vmem:[%s4854_s10 + $0x48] sm:$0xff] %vm557_vm0, %v583_v37  ;;  %v722_v3 = vmax.f32 %v682_v38, %v5027_v30  ;;  %813 = vmatpush.msra.mxu1 %v812_v51  ;;  %v5055_v15 = vsub.f32 %v723_v14, %v5035_v35  ;;  %v5062_v27 = vsel %vm617_vm2, %v618_v58, %v619_v8  ;;  %v600_v37 = vld [vmem:[%s5870_s1 + $0x8] sm:$0xff]  ;;  %v739_v39 = vsel %vm737_vm4, %v599_v20, 0  ;;  %s5880_s1 = sld [smem:[#allocation25_spill]] }
  0x56   : > { %v5065_v33 = vsel %vm657_vm3, %v658_v60, %v659_v11  ;;  %v5068_v36 = vsel %vm697_vm1, %v698_v45, %v699_v12  ;;  %v817_v14 = vsub.f32 %v5001_v61, %v5846_v62  ;;  %v549_v51 = vmul.f32 4.0, %v541_v7 }
  0x57   : > { %v5076_v38 = vand.u32 4294901760, %v722_v3  ;;  %v582_v8 = vmul.f32 4.0, %v574_v9  ;;  %v641_v11 = vmax.f32 %v5033_v34, %v5062_v27  ;;  %878 = vmatpush.msra.mxu2 %v5055_v15  ;;  %v5845_v52 = vand.u32 4294901760, %v5038_v46 }
  0x58   : > { %v818_v12 = vand.u32 4294901760, %v817_v14  ;;  %v5847_v58 = vand.u32 4294901760, %v5055_v15  ;;  %558 = vst.msk [vmem:[%s4854_s10] sm:$0xff] %vm557_vm0, %v549_v51  ;;  %v5088_v45 = vand.u32 4294901760, %v739_v39  ;;  %v742_v9 = vsel %vm737_vm4, %v600_v37, 0 }
  0x59   : > { %768 = vmatpush.msra.mxu0 %v5076_v38  ;;  %v681_v60 = vmax.f32 %v641_v11, %v5065_v33  ;;  %v5091_v7 = vsub.f32 %v722_v3, %v5076_v38  ;;  %917 = vmatpush.msra.mxu3 %v5076_v38  ;;  %4295 = vst.msk [vmem:[%s4854_s10 + $0x40] sm:$0xff] %vm557_vm0, %v582_v8  ;;  %v5105_v3 = vand.u32 4294901760, %v742_v9  ;;  %vm1910_vm5 = vcmask 121856  }
  0x5a   : > { %819 = vmatpush.msra.mxu1 %v818_v12  ;;  %v823_v20 = vsub.f32 %v5038_v46, %v5845_v52  ;;  %v829_v14 = vsub.f32 %v5055_v15, %v5847_v58  ;;  %v656_v51 = vmin.f32 %v4812_v0, %v4821_v4  ;;  %v5109_v37 = vsub.f32 %v739_v39, %v5088_v45 }
  0x5b   : > { %v721_v11 = vmax.f32 %v681_v60, %v5068_v36  ;;  %881 = vmatpush.msra.mxu2 %v5091_v7  ;;  %v834_v8 = vand.u32 4294901760, %v5091_v7  ;;  %v655_v12 = vmin.f32 %v4815_v1, %v4837_v16  ;;  %v5117_v0 = vsub.f32 %v742_v9, %v5105_v3 }
  0x5c   : > { %v824_v52 = vand.u32 4294901760, %v823_v20  ;;  %v830_v62 = vand.u32 4294901760, %v829_v14  ;;  %v696_v58 = vmin.f32 %v656_v51, %v4824_v5  ;;  %v5122_v60 = vand.u32 4294901760, %v5109_v37 }
  0x5d   : > { %v5119_v4 = vand.u32 4294901760, %v721_v11  ;;  %v835_v39 = vsub.f32 %v5091_v7, %v834_v8  ;;  %v695_v13 = vmin.f32 %v655_v12, %v4848_v25  ;;  %v5130_v16 = vand.u32 4294901760, %v5117_v0 }
  0x5e   : > { %825 = vmatpush.msra.mxu1 %v824_v52  ;;  %v736_v1 = vmin.f32 %v696_v58, %v4827_v6  ;;  %v654_v5 = vmin.f32 %v4844_v22, %v4880_v41  ;;  %v653_v9 = vmin.f32 %v4863_v31, %v4915_v59  ;;  %v774_v20 = vsub.f32 %v5109_v37, %v5122_v60 }
  0x5f   : > { %770 = vmatpush.msra.mxu0 %v5119_v4  ;;  %v5140_v14 = vsub.f32 %v721_v11, %v5119_v4  ;;  %919 = vmatpush.msra.mxu3 %v5119_v4  ;;  %v836_v6 = vand.u32 4294901760, %v835_v39  ;;  %v735_v25 = vmin.f32 %v695_v13, %v4852_v26  ;;  %v782_v31 = vsub.f32 %v5117_v0, %v5130_v16 }
  0x60   : > { %831 = vmatpush.msra.mxu1 %v830_v62  ;;  %v1016_v22 = vsel %vm697_vm1, %v736_v1, 0  ;;  %v694_v41 = vmin.f32 %v654_v5, %v4883_v42  ;;  %v693_v59 = vmin.f32 %v653_v9, %v4922_v63  ;;  %v5151_v52 = vand.u32 4294901760, %v774_v20  ;;  %923 = vmatmul.f32.vlgmr.msra.gmra.mxu3 %v5122_v60 }
  0x61   : > { %944 = vmatpush.msrb.mxu0 %v798_v18  ;;  %884 = vmatpush.msra.mxu2 %v5140_v14  ;;  %v5155_v26 = vand.u32 4294901760, %v1016_v22  ;;  %v840_v48 = vand.u32 4294901760, %v5140_v14  ;;  %v5158_v18 = vand.u32 4294901760, %v735_v25  ;;  %v652_v13 = vmin.f32 %v4908_v56, %v4941_v17 }
  0x62   : > { %887 = vmatmul.f32.vlgmr.msra.gmra.mxu2 %v5109_v37  ;;  %v734_v42 = vmin.f32 %v694_v41, %v4886_v43  ;;  %v733_v63 = vmin.f32 %v693_v59, %v4925_v2  ;;  %776 = vmatmul.f32.vlgmr.msra.gmra.mxu0 %v5151_v52  ;;  %v5871_v43 = vand.u32 4294901760, %v4963_v29  ;;  %v651_v58 = vmin.f32 %v4945_v19, %v4980_v47 }
  0x63   : > { %948 = vmatpush.msrb.mxu0 %v804_v49  ;;  %837 = vmatpush.msra.mxu1 %v836_v6  ;;  %v5169_v62 = vsub.f32 %v1016_v22, %v5155_v26  ;;  %v841_v55 = vsub.f32 %v5140_v14, %v840_v48  ;;  %v5175_v49 = vsub.f32 %v735_v25, %v5158_v18  ;;  %v5872_v39 = vand.u32 4294901760, %v5001_v61 }
  0x64   : > { %1027 = vmatpush.msrb.mxu2 %v5155_v26  ;;  %v5180_v2 = vand.u32 4294901760, %v734_v42  ;;  %v5182_v56 = vand.u32 4294901760, %v733_v63  ;;  %v692_v17 = vmin.f32 %v652_v13, %v4952_v23  ;;  %v650_v29 = vmin.f32 %v4985_v50, %v5018_v21 }
  0x65   : > { %952 = vmatpush.msrb.mxu0 %v5871_v43  ;;  %v1069_v51 = vand.u32 4294901760, %v5169_v62  ;;  %v842_v11 = vand.u32 4294901760, %v841_v55  ;;  %v1075_v12 = vand.u32 4294901760, %v5175_v49  ;;  %v5194_v1 = vand.u32 4294901760, %v782_v31 }
  0x66   : > { %1029 = vmatpush.msrb.mxu2 %v5158_v18  ;;  %v5197_v23 = vsub.f32 %v734_v42, %v5180_v2  ;;  %v5200_v19 = vsub.f32 %v733_v63, %v5182_v56  ;;  %v732_v47 = vmin.f32 %v692_v17, %v4955_v24  ;;  %v691_v61 = vmin.f32 %v651_v58, %v4990_v53 }
  0x67   : > { %956 = vmatpush.msrb.mxu0 %v5872_v39  ;;  %v1070_v5 = vsub.f32 %v5169_v62, %v1069_v51  ;;  %843 = vmatpush.msra.mxu1 %v842_v11  ;;  %v1076_v50 = vsub.f32 %v5175_v49, %v1075_v12  ;;  %v690_v21 = vmin.f32 %v650_v29, %v5024_v28  ;;  %v5873_v9 = vand.u32 4294901760, %v5038_v46 }
  0x68   : > { %845 = vmatmul.f32.vlgmr.msra.gmra.mxu1 %v5088_v45  ;;  %v1081_v24 = vand.u32 4294901760, %v5197_v23  ;;  %v1087_v20 = vand.u32 4294901760, %v5200_v19  ;;  %v5216_v6 = vand.u32 4294901760, %v732_v47  ;;  %v649_v25 = vmin.f32 %v5033_v34, %v5062_v27  ;;  %1031 = vmatpush.msrb.mxu2 %v5180_v2 }
  0x69   : > { %960 = vmatpush.msrb.mxu0 %v5873_v9  ;;  %v1071_v22 = vand.u32 4294901760, %v1070_v5  ;;  %v1077_v31 = vand.u32 4294901760, %v1076_v50  ;;  %991 = vmatpush.msrb.mxu1 %v4875_v40  ;;  %v731_v53 = vmin.f32 %v691_v61, %v4993_v54  ;;  %v730_v28 = vmin.f32 %v690_v21, %v5027_v30 }
  0x6a   : > { %v1082_v46 = vsub.f32 %v5197_v23, %v1081_v24  ;;  %v5874_v41 = vand.u32 4294901760, %v5055_v15  ;;  %v1088_v34 = vsub.f32 %v5200_v19, %v1087_v20  ;;  %892 = vmatmul.f32.gmra.mxu2 %v5117_v0  ;;  %v5234_v40 = vsub.f32 %v732_v47, %v5216_v6  ;;  %784 = vmatmul.f32.gmra.mxu0 %v5194_v1 }
  0x6b   : > { %1072 = vmatpush.msrb.mxu3 %v1071_v22  ;;  %v5237_v54 = vand.u32 4294901760, %v731_v53  ;;  %v5239_v30 = vand.u32 4294901760, %v730_v28  ;;  %v689_v27 = vmin.f32 %v649_v25, %v5065_v33  ;;  %993 = vmatpush.msrb.mxu1 %v4888_v44  ;;  %vm3846_vm6 = vcmask 130048  }
  0x6c   : > { %964 = vmatpush.msrb.mxu0 %v5874_v41  ;;  %v1083_v15 = vand.u32 4294901760, %v1082_v46  ;;  %1033 = vmatpush.msrb.mxu2 %v5182_v56  ;;  %v1093_v59 = vand.u32 4294901760, %v5234_v40  ;;  %v1089_v42 = vand.u32 4294901760, %v1088_v34  ;;  %vm2585_vm7 = vcmask 56320  }
  0x6d   : > { %1078 = vmatpush.msrb.mxu3 %v1077_v31  ;;  %v5248_v63 = vsub.f32 %v731_v53, %v5237_v54  ;;  %v5251_v13 = vsub.f32 %v730_v28, %v5239_v30  ;;  %v729_v33 = vmin.f32 %v689_v27, %v5068_v36  ;;  %995 = vmatpush.msrb.mxu1 %v4933_v10  ;;  %v608_v27 = vld [vmem:[%s5875_s2 + $0x38] sm:$0x1f]  ;;  %vm3872_vm8 = vcmask 64512  }
  0x6e   : > { %968 = vmatpush.msrb.mxu0 %v834_v8  ;;  %929 = vmatmul.f32.gmra.mxu3 %v5130_v16  ;;  %v1094_v44 = vsub.f32 %v5234_v40, %v1093_v59  ;;  %vm3208_vm9 = vcmask 23552   ;;  %vm3212_vm10 = vcmask 1042432   ;;  %vm3897_vm11 = vcmask 27648  }
  0x6f   : > { %1084 = vmatpush.msrb.mxu3 %v1083_v15  ;;  %1035 = vmatpush.msrb.mxu2 %v5216_v6  ;;  %v1099_v7 = vand.u32 4294901760, %v5248_v63  ;;  %v1105_v8 = vand.u32 4294901760, %v5251_v13  ;;  %v5260_v55 = vand.u32 4294901760, %v729_v33  ;;  %v1345_v15 = vsel %vm697_vm1, %v608_v27, 0 }
  0x70   : > { %v1095_v43 = vand.u32 4294901760, %v1094_v44  ;;  %972 = vmatpush.msrb.mxu0 %v840_v48  ;;  %997 = vmatpush.msrb.mxu1 %v4967_v32 }
  0x71   : > { %1090 = vmatpush.msrb.mxu3 %v1089_v42  ;;  %1037 = vmatpush.msrb.mxu2 %v5237_v54  ;;  %v1100_v10 = vsub.f32 %v5248_v63, %v1099_v7  ;;  %v1106_v36 = vsub.f32 %v5251_v13, %v1105_v8  ;;  %v1110_v17 = vsub.f32 %v729_v33, %v5260_v55  ;;  %v607_v42 = vld [vmem:[%s5875_s2 + $0x30] sm:$0xff]  ;;  %v606_v33 = vld [vmem:[%s5875_s2 + $0x28] sm:$0xff] }
  0x72   : > { %849 = vmatmul.f32.gmra.mxu1 %v5105_v3  ;;  %1134 = vmatpush.msra.mxu0 %v5169_v62 }
  0x73   : > { %1096 = vmatpush.msrb.mxu3 %v1095_v43  ;;  %v1101_v58 = vand.u32 4294901760, %v1100_v10  ;;  %974 = vmatmul.f32.vlgmr.msrb.gmra.mxu0 %v5088_v45  ;;  %v1107_v14 = vand.u32 4294901760, %v1106_v36  ;;  %v1111_v48 = vand.u32 4294901760, %v1110_v17 }
  0x74   : > { %999 = vmatpush.msrb.mxu1 %v4995_v57  ;;  %1039 = vmatpush.msrb.mxu2 %v5239_v30 }
  0x75   : > { %1102 = vmatpush.msrb.mxu3 %v1101_v58  ;;  %v1112_v32 = vsub.f32 %v1110_v17, %v1111_v48  ;;  %1137 = vmatpush.msra.mxu0 %v5175_v49  ;;  %v604_v58 = vld [vmem:[%s5875_s2 + $0x18] sm:$0xff] }
  0x76   : > { %1001 = vmatpush.msrb.mxu1 %v5035_v35  ;;  %1041 = vmatpush.msrb.mxu2 %v5260_v55 }
  0x77   : > { %1108 = vmatpush.msrb.mxu3 %v1107_v14  ;;  %v1113_v11 = vand.u32 4294901760, %v1112_v32  ;;  %1047 = vmatmul.f32.vlgmr.msrb.gmra.mxu2 %v5151_v52 }
  0x78   : > { %1003 = vmatpush.msrb.mxu1 %v5076_v38  ;;  %1140 = vmatpush.msra.mxu0 %v5197_v23 }
  0x79   : > { %1114 = vmatpush.msrb.mxu3 %v1113_v11  ;;  %1215 = vmatpush.msra.mxu2 %v1069_v51 }
  0x7a   : > { %1116 = vmatmul.f32.vlgmr.msrb.gmra.mxu3 %v5088_v45  ;;  %1005 = vmatpush.msrb.mxu1 %v5119_v4 }
  0x7b   : > { %1143 = vmatpush.msra.mxu0 %v5200_v19  ;;  %1219 = vmatpush.msra.mxu2 %v1075_v12 }
  0x7c   : > { %1262 = vmatpush.msra.mxu3 %v5155_v26  ;;  %978 = vmatmul.f32.gmra.mxu0 %v5105_v3 }
  0x7d   : > { %1007 = vmatmul.f32.vlgmr.msrb.gmra.mxu1 %v5088_v45  ;;  %1146 = vmatpush.msra.mxu0 %v5234_v40 }
  0x7e   : > { %1176 = vmatpush.msra.mxu1 %v5155_v26  ;;  %1223 = vmatpush.msra.mxu2 %v1081_v24 }
  0x7f   : > { %1264 = vmatpush.msra.mxu3 %v5158_v18  ;;  %1149 = vmatpush.msra.mxu0 %v5248_v63 }
  0x80   : > { %1178 = vmatpush.msra.mxu1 %v5158_v18  ;;  %1227 = vmatpush.msra.mxu2 %v1087_v20 }
  0x81   : > { %1266 = vmatpush.msra.mxu3 %v5180_v2  ;;  %1055 = vmatmul.f32.gmra.mxu2 %v5194_v1 }
  0x82   : > { %1120 = vmatmul.f32.gmra.mxu3 %v5105_v3  ;;  %1152 = vmatpush.msra.mxu0 %v5251_v13  ;;  %v5363_v13 = vand.u32 4294901760, %v607_v42 }
  0x83   : > { %1180 = vmatpush.msra.mxu1 %v5180_v2  ;;  %1231 = vmatpush.msra.mxu2 %v1093_v59  ;;  %v5355_v59 = vand.u32 4294901760, %v1345_v15 }
  0x84   : > { %1268 = vmatpush.msra.mxu3 %v5182_v56  ;;  %1155 = vmatpush.msra.mxu0 %v1110_v17 }
  0x85   : > { %1182 = vmatpush.msra.mxu1 %v5182_v56  ;;  %1235 = vmatpush.msra.mxu2 %v1099_v7  ;;  %v5361_v63 = vsub.f32 %v1345_v15, %v5355_v59  ;;  %v5374_v7 = vsub.f32 %v607_v42, %v5363_v13 }
  0x86   : > { %1270 = vmatpush.msra.mxu3 %v5216_v6  ;;  %1011 = vmatmul.f32.gmra.mxu1 %v5105_v3 }
  0x87   : > { %1158 = vmatmul.f32.vlgmr.msra.gmra.mxu0 %v5109_v37  ;;  %1184 = vmatpush.msra.mxu1 %v5216_v6  ;;  %v5371_v44 = vand.u32 4294901760, %v5361_v63  ;;  %v5387_v10 = vand.u32 4294901760, %v5374_v7 }
  0x88   : > { %1239 = vmatpush.msra.mxu2 %v1105_v8  ;;  %1272 = vmatpush.msra.mxu3 %v5237_v54  ;;  %v5377_v8 = vand.u32 4294901760, %v606_v33 }
  0x89   : > { %1186 = vmatpush.msra.mxu1 %v5237_v54  ;;  %1356 = vmatpush.msrb.mxu0 %v5355_v59  ;;  %v1399_v43 = vsub.f32 %v5361_v63, %v5371_v44 }
  0x8a   : > { %1243 = vmatpush.msra.mxu2 %v1111_v48  ;;  %1274 = vmatpush.msra.mxu3 %v5239_v30  ;;  %v5390_v36 = vsub.f32 %v606_v33, %v5377_v8  ;;  %v1405_v48 = vsub.f32 %v5374_v7, %v5387_v10 }
  0x8b   : > { %1245 = vmatmul.f32.vlgmr.msra.gmra.mxu2 %v5088_v45  ;;  %1188 = vmatpush.msra.mxu1 %v5239_v30  ;;  %v1400_v14 = vand.u32 4294901760, %v1399_v43 }
  0x8c   : > { %1276 = vmatpush.msra.mxu3 %v5260_v55  ;;  %1463 = vmatpush.msrb.mxu2 %v5361_v63  ;;  %v5403_v32 = vand.u32 4294901760, %v5390_v36 }
  0x8d   : > { %1278 = vmatmul.f32.vlgmr.msra.gmra.mxu3 %v5088_v45  ;;  %1190 = vmatpush.msra.mxu1 %v5260_v55  ;;  %v605_v55 = vld [vmem:[%s5875_s2 + $0x20] sm:$0xff] }
  0x8e   : > { %1194 = vmatmul.f32.vlgmr.msra.gmra.mxu1 %v5122_v60  ;;  %1505 = vmatpush.msrb.mxu3 %v5355_v59  ;;  %v5393_v17 = vand.u32 4294901760, %v605_v55 }
  0x8f   : > { %1163 = vmatmul.f32.gmra.mxu0 %v5117_v0  ;;  %1466 = vmatpush.msrb.mxu2 %v5374_v7 }
  0x90   : > { %1507 = vmatpush.msrb.mxu3 %v5363_v13  ;;  %1358 = vmatpush.msrb.mxu0 %v5363_v13  ;;  %v5406_v11 = vsub.f32 %v605_v55, %v5393_v17 }
  0x91   : > { %1469 = vmatpush.msrb.mxu2 %v5390_v36  ;;  %1401 = vmatpush.msrb.mxu1 %v1400_v14 }
  0x92   : > { %1509 = vmatpush.msrb.mxu3 %v5377_v8  ;;  %1360 = vmatpush.msrb.mxu0 %v5377_v8 }
  0x93   : > { %1249 = vmatmul.f32.gmra.mxu2 %v5105_v3 }
  0x94   : > { %1511 = vmatpush.msrb.mxu3 %v5393_v17  ;;  %1362 = vmatpush.msrb.mxu0 %v5393_v17 }
  0x95   : > { %1282 = vmatmul.f32.gmra.mxu3 %v5105_v3  ;;  %1472 = vmatpush.msrb.mxu2 %v5406_v11 }
  0x96   : > { %1200 = vmatmul.f32.gmra.mxu1 %v5130_v16 }
  0xdf   : > { %v777_v57 = vpop.f32.mrf.mxu0 }
  0xe3   : > { %v924_v4 = vpop.f32.mrf.mxu3 }
  0xe5   : > { %v846_v35 = vpop.f32.mrf.mxu1  ;;  %v888_v38 = vpop.f32.mrf.mxu2 }
  0xe6   : > { %v847_v52 = vadd.f32 %v846_v35, %v777_v57  ;;  %v5410_v57 = vand.u32 4294901760, %v604_v58  ;;  %v603_v35 = vld [vmem:[%s5875_s2 + $0x10] sm:$0xff] }
  0xe7   : > { %v785_v37 = vpop.f32.mrf.mxu0 }
  0xe8   : > { %v889_v62 = vadd.f32 %v888_v38, %v847_v52  ;;  %v1406_v38 = vand.u32 4294901760, %v1405_v48  ;;  %v5422_v52 = vand.u32 4294901760, %v603_v35  ;;  %1513 = vmatpush.msrb.mxu3 %v5410_v57  ;;  %1364 = vmatpush.msrb.mxu0 %v5410_v57 }
  0xea   : > { %v925_v60 = vadd.f32 %v924_v4, %v889_v62  ;;  %v5419_v4 = vand.u32 4294901760, %v5406_v11  ;;  %1407 = vmatpush.msrb.mxu1 %v1406_v38  ;;  %1515 = vmatpush.msrb.mxu3 %v5422_v52 }
  0xeb   : > { %1366 = vmatpush.msrb.mxu0 %v5422_v52 }
  0xec   : > { %v1417_v62 = vsub.f32 %v5406_v11, %v5419_v4 }
  0xed   : > { %v893_v45 = vpop.f32.mrf.mxu2 }
  0xef   : > { %v850_v26 = vpop.f32.mrf.mxu1 }
  0xf0   : > { %v975_v18 = vpop.f32.mrf.mxu0  ;;  %v851_v2 = vadd.f32 %v850_v26, %v785_v37  ;;  %v1411_v37 = vsub.f32 %v5390_v36, %v5403_v32  ;;  %v5425_v26 = vsub.f32 %v604_v58, %v5410_v57 }
  0xf1   : > { %v930_v49 = vpop.f32.mrf.mxu3  ;;  %v976_v0 = vadd.f32 %v975_v18, %v925_v60 }
  0xf2   : > { %v894_v16 = vadd.f32 %v893_v45, %v851_v2  ;;  %v602_v45 = vld [vmem:[%s5875_s2 + $0x8] sm:$0xff]  ;;  %v1412_v18 = vand.u32 4294901760, %v1411_v37  ;;  %v5440_v2 = vand.u32 4294901760, %v5425_v26  ;;  %1475 = vmatpush.msrb.mxu2 %v5425_v26 }
  0xf3   : > { %v5437_v60 = vand.u32 4294901760, %v602_v45 }
  0xf4   : > { %v931_v39 = vadd.f32 %v930_v49, %v894_v16  ;;  %v5435_v49 = vsub.f32 %v603_v35, %v5422_v52  ;;  %1413 = vmatpush.msrb.mxu1 %v1412_v18 }
  0xf5   : > { %1517 = vmatpush.msrb.mxu3 %v5437_v60  ;;  %1368 = vmatpush.msrb.mxu0 %v5437_v60 }
  0xf6   : > { %1478 = vmatpush.msrb.mxu2 %v5435_v49 }
  0xf9   : > { %v979_v12 = vpop.f32.mrf.mxu0 }
  0xfa   : > { %v1008_v56 = vpop.f32.mrf.mxu1  ;;  %v1048_v51 = vpop.f32.mrf.mxu2  ;;  %v980_v1 = vadd.f32 %v979_v12, %v931_v39  ;;  %v5451_v12 = vsub.f32 %v602_v45, %v5437_v60 }
  0xfb   : > { %v5323_v3 = vadd.f32 %v1008_v56, %v976_v0  ;;  %v601_v0 = vld [vmem:[%s5875_s2] sm:$0xff]  ;;  %v1418_v56 = vand.u32 4294901760, %v1417_v62  ;;  %s3967_s2 = scalar_lea.hbm %s5880_s1, %s4344_s16 }
  0xfc   : > { %v5453_v16 = vand.u32 4294901760, %v601_v0  ;;  %1481 = vmatpush.msrb.mxu2 %v5451_v12 }
  0xfd   : > { %1322 = vrot.lane.b32.xlu1 %v5323_v3, %s4642_s22  ;;  %1288 = vrot.lane.b32.xlu0 %v5323_v3, %s4643_s23  ;;  %v1117_v29 = vpop.f32.mrf.mxu3 }
  0xfe   : > { %v1118_v50 = vadd.f32 %v1117_v29, %v1048_v51  ;;  %v5448_v51 = vand.u32 4294901760, %v5435_v49  ;;  %v1423_v29 = vsub.f32 %v5425_v26, %v5440_v2  ;;  %1419 = vmatpush.msrb.mxu1 %v1418_v56  ;;  %1519 = vmatpush.msrb.mxu3 %v5453_v16 }
  0xff   : > { %1370 = vmatpush.msrb.mxu0 %v5453_v16 }
 0x100   : > { %v1429_v39 = vsub.f32 %v5435_v49, %v5448_v51  ;;  %1675 = vmatpush.msra.mxu3 %v1400_v14 }
 0x101   : > { %1544 = vmatpush.msra.mxu0 %v5371_v44 }
 0x102   : > { %1681 = vmatpush.msra.mxu3 %v1406_v38 }
 0x103   : > { %v1012_v23 = vpop.f32.mrf.mxu1  ;;  %1548 = vmatpush.msra.mxu0 %v5387_v10 }
 0x104   : > { %v5329_v19 = vadd.f32 %v1012_v23, %v980_v1  ;;  %v1056_v47 = vpop.f32.mrf.mxu2  ;;  %v1159_v5 = vpop.f32.mrf.mxu0  ;;  %v5463_v1 = vand.u32 4294901760, %v5451_v12  ;;  %v5466_v23 = vsub.f32 %v601_v0, %v5453_v16  ;;  %1687 = vmatpush.msra.mxu3 %v1412_v18 }
 0x105   : > { %1306 = vrot.lane.b32.xlu0 %v5323_v3, %s4644_s24  ;;  %v1121_v61 = vpop.f32.mrf.mxu3  ;;  %v1160_v21 = vadd.f32 %v1159_v5, %v1118_v50  ;;  %v1430_v5 = vand.u32 4294901760, %v1429_v39  ;;  %1552 = vmatpush.msra.mxu0 %v5403_v32 }
 0x106   : > { %1308 = vrot.lane.b32.xlu2 %v5329_v19, %s4644_s24  ;;  %1290 = vrot.lane.b32.xlu1 %v5329_v19, %s4643_s23  ;;  %v1122_v22 = vadd.f32 %v1121_v61, %v1056_v47  ;;  %v1424_v47 = vand.u32 4294901760, %v1423_v29  ;;  %v1435_v50 = vsub.f32 %v5451_v12, %v5463_v1  ;;  %v5474_v61 = vand.u32 4294901760, %v5466_v23 }
 0x107   : > { %1484 = vmatpush.msrb.mxu2 %v5466_v23  ;;  %1693 = vmatpush.msra.mxu3 %v1418_v56 }
 0x108   : > { %1425 = vmatpush.msrb.mxu1 %v1424_v47  ;;  %1556 = vmatpush.msra.mxu0 %v5419_v4 }
 0x109   : > { %1630 = vmatpush.msra.mxu2 %v5355_v59  ;;  %1699 = vmatpush.msra.mxu3 %v1424_v47 }
 0x10a   : > { %1431 = vmatpush.msrb.mxu1 %v1430_v5  ;;  %1560 = vmatpush.msra.mxu0 %v5440_v2 }
 0x10b   : > { %v1195_v9 = vpop.f32.mrf.mxu1  ;;  %1632 = vmatpush.msra.mxu2 %v5363_v13  ;;  %1705 = vmatpush.msra.mxu3 %v1430_v5  ;;  %v1889_v5 = vld [vmem:[%s5876_s3] sm:$0xff]  ;;  %s5723_s3 = scalar_lea.sflag [#allocation7], %s3938_s11 }
 0x10c   : > { %v1196_v24 = vadd.f32 %v1195_v9, %v1160_v21  ;;  %v1164_v6 = vpop.f32.mrf.mxu0  ;;  %v1436_v21 = vand.u32 4294901760, %v1435_v50  ;;  %v1441_v9 = vsub.f32 %v5466_v23, %v5474_v61  ;;  %1564 = vmatpush.msra.mxu0 %v5448_v51 }
 0x10d   : > { %v1165_v28 = vadd.f32 %v1164_v6, %v1122_v22  ;;  %1634 = vmatpush.msra.mxu2 %v5377_v8 }
 0x10e   : > { %v1246_v20 = vpop.f32.mrf.mxu2  ;;  %1324 = vrot.lane.b32.xlu2 %v5329_v19, %s4642_s22  ;;  %1437 = vmatpush.msrb.mxu1 %v1436_v21 }
 0x10f   : > { %v1247_v25 = vadd.f32 %v1246_v20, %v1196_v24  ;;  %v1442_v24 = vand.u32 4294901760, %v1441_v9  ;;  %1636 = vmatpush.msra.mxu2 %v5393_v17  ;;  %1711 = vmatpush.msra.mxu3 %v1436_v21  ;;  %v1912_v9 = vsel %vm1910_vm5, %v1889_v5, 0 }
 0x110   : > { %v1279_v31 = vpop.f32.mrf.mxu3  ;;  %1568 = vmatpush.msra.mxu0 %v5463_v1 }
 0x111   : > { %v5337_v53 = vadd.f32 %v1279_v31, %v1247_v25  ;;  %1443 = vmatpush.msrb.mxu1 %v1442_v24  ;;  %1638 = vmatpush.msra.mxu2 %v5410_v57 }
 0x112   : > { %1717 = vmatpush.msra.mxu3 %v1442_v24  ;;  %1572 = vmatpush.msra.mxu0 %v5474_v61 }
 0x113   : > { %1298 = vrot.lane.b32.xlu0 %v5337_v53, %s4643_s23  ;;  %1314 = vrot.lane.b32.xlu1 %v5337_v53, %s4644_s24  ;;  %v1201_v46 = vpop.f32.mrf.mxu1 }
 0x114   : > { %v1202_v41 = vadd.f32 %v1201_v46, %v1165_v28  ;;  %1591 = vmatpush.msra.mxu1 %v5355_v59  ;;  %1640 = vmatpush.msra.mxu2 %v5422_v52 }
 0x116   : > { %v1250_v34 = vpop.f32.mrf.mxu2  ;;  %1330 = vrot.lane.b32.xlu2 %v5337_v53, %s4642_s22  ;;  %1593 = vmatpush.msra.mxu1 %v5363_v13 }
 0x117   : > { %v1251_v40 = vadd.f32 %v1250_v34, %v1202_v41  ;;  %1642 = vmatpush.msra.mxu2 %v5437_v60 }
 0x118   : > { %v1283_v54 = vpop.f32.mrf.mxu3  ;;  %1595 = vmatpush.msra.mxu1 %v5377_v8 }
 0x119   : > { %v5344_v30 = vadd.f32 %v1283_v54, %v1251_v40  ;;  %1644 = vmatpush.msra.mxu2 %v5453_v16 }
 0x11a   : > { %1597 = vmatpush.msra.mxu1 %v5393_v17 }
 0x11b   : > { %1300 = vrot.lane.b32.xlu0 %v5344_v30, %s4643_s23  ;;  %1316 = vrot.lane.b32.xlu1 %v5344_v30, %s4644_s24 }
 0x11c   : > { %1599 = vmatpush.msra.mxu1 %v5410_v57 }
 0x11e   : > { %1332 = vrot.lane.b32.xlu2 %v5344_v30, %s4642_s22  ;;  %1601 = vmatpush.msra.mxu1 %v5422_v52  ;;  %s5675_s22 = scalar_lea.vmem [#allocation9], %s4284_s20  ;;  %s3987_s20 = sshll.u32 %s5570_s18, 4  ;;  %s3988_s20 = int_to_ptr.vmem [resolvable:$true] %s3987_s20 }
 0x120   : > { %1603 = vmatpush.msra.mxu1 %v5437_v60 }
 0x122   : > { %1605 = vmatpush.msra.mxu1 %v5453_v16 }
 0x160   : > { %v1309_v25 = vpop.permute.xlu2 %1308 }
 0x168   : > { %v1325_v54 = vpop.permute.xlu2 %1324 }
 0x16f   : > { %v1323_v20 = vpop.permute.xlu1 %1322  ;;  %v1289_v6 = vpop.permute.xlu0 %1288 }
 0x170   : > { %v1294_v22 = vmax.f32 %v5323_v3, %v1289_v6  ;;  %v1331_v45 = vpop.permute.xlu2 %1330 }
 0x177   : > { %v1307_v31 = vpop.permute.xlu0 %1306 }
 0x178   : > { %v1312_v28 = vmax.f32 %v1294_v22, %v1307_v31  ;;  %v1291_v46 = vpop.permute.xlu1 %1290 }
 0x179   : > { %v1295_v41 = vmax.f32 %v5329_v19, %v1291_v46 }
 0x17a   : > { %v1328_v34 = vmax.f32 %v1312_v28, %v1323_v20 }
 0x17b   : > { %v1313_v40 = vmax.f32 %v1295_v41, %v1309_v25  ;;  %v5560_v25 = vand.u32 4294901760, %v1912_v9 }
 0x17c   : > { %v1339_v27 = vsel %vm737_vm4, %v1328_v34, 0 }
 0x17d   : > { %v5507_v15 = vand.u32 4294901760, %v1339_v27  ;;  %v1329_v42 = vmax.f32 %v1313_v40, %v1325_v54  ;;  %v5563_v40 = vsub.f32 %v1912_v9, %v5560_v25 }
 0x17f   : > { %v1372_v33 = vsub.f32 %v1339_v27, %v5507_v15  ;;  %v1342_v55 = vsel %vm737_vm4, %v1329_v42, 0  ;;  %1445 = vmatmul.f32.vlgmr.msrb.gmra.mxu1 %v5507_v15 }
 0x180   : > { %v5512_v3 = vand.u32 4294901760, %v1342_v55  ;;  %1779 = vmatpush.msrb.mxu1 %v5355_v59 }
 0x181   : > { %1487 = vmatmul.f32.vlgmr.msrb.gmra.mxu2 %v1372_v33  ;;  %v1373_v19 = vand.u32 4294901760, %v1372_v33 }
 0x182   : > { %v1380_v43 = vsub.f32 %v1342_v55, %v5512_v3  ;;  %1781 = vmatpush.msrb.mxu1 %v5363_v13  ;;  %1818 = vmatpush.msrb.mxu2 %v5371_v44 }
 0x183   : > { %1523 = vmatmul.f32.vlgmr.msrb.gmra.mxu3 %v1373_v19  ;;  %v1374_v58 = vsub.f32 %v1372_v33, %v1373_v19  ;;  %v5566_v19 = vand.u32 4294901760, %v5563_v40 }
 0x184   : > { %1783 = vmatpush.msrb.mxu1 %v5377_v8  ;;  %1865 = vmatpush.msrb.mxu3 %v5355_v59  ;;  %v1381_v38 = vand.u32 4294901760, %v1380_v43 }
 0x185   : > { %v1299_v14 = vpop.permute.xlu0 %1298  ;;  %v1315_v48 = vpop.permute.xlu1 %1314  ;;  %v1375_v35 = vand.u32 4294901760, %v1374_v58  ;;  %1822 = vmatpush.msrb.mxu2 %v5387_v10 }
 0x186   : > { %v1304_v37 = vmin.f32 %v5337_v53, %v1299_v14  ;;  %1785 = vmatpush.msrb.mxu1 %v5393_v17  ;;  %1867 = vmatpush.msrb.mxu3 %v5363_v13  ;;  %v1382_v59 = vsub.f32 %v1380_v43, %v1381_v38 }
 0x187   : > { %1376 = vmatmul.f32.vlgmr.msrb.gmra.mxu0 %v1375_v35  ;;  %1449 = vmatmul.f32.gmra.mxu1 %v5512_v3 }
 0x188   : > { %v1320_v44 = vmin.f32 %v1304_v37, %v1315_v48  ;;  %1737 = vmatpush.msrb.mxu0 %v5361_v63  ;;  %1787 = vmatpush.msrb.mxu1 %v5410_v57  ;;  %v1383_v18 = vand.u32 4294901760, %v1382_v59 }
 0x189   : > { %1492 = vmatmul.f32.gmra.mxu2 %v1380_v43  ;;  %1869 = vmatpush.msrb.mxu3 %v5377_v8 }
 0x18a   : > { %v1336_v10 = vmin.f32 %v1320_v44, %v1331_v45  ;;  %1740 = vmatpush.msrb.mxu0 %v5374_v7  ;;  %1789 = vmatpush.msrb.mxu1 %v5422_v52  ;;  %v1938_v45 = vsub.f32 %v5563_v40, %v5566_v19 }
 0x18b   : > { %1529 = vmatmul.f32.gmra.mxu3 %v1381_v38  ;;  %1826 = vmatpush.msrb.mxu2 %v5403_v32 }
 0x18c   : > { %v1616_v53 = vsel %vm737_vm4, %v1336_v10, 0  ;;  %1871 = vmatpush.msrb.mxu3 %v5393_v17  ;;  %1743 = vmatpush.msrb.mxu0 %v5390_v36  ;;  %v1333_v36 = vpop.permute.xlu2 %1332 }
 0x18d   : > { %v1645_v63 = vand.u32 4294901760, %v1616_v53  ;;  %v1301_v13 = vpop.permute.xlu0 %1300  ;;  %1791 = vmatpush.msrb.mxu1 %v5437_v60  ;;  %1830 = vmatpush.msrb.mxu2 %v5419_v4  ;;  %v1317_v32 = vpop.permute.xlu1 %1316 }
 0x18e   : > { %v1305_v7 = vmin.f32 %v5344_v30, %v1301_v13  ;;  %1873 = vmatpush.msrb.mxu3 %v5410_v57  ;;  %1746 = vmatpush.msrb.mxu0 %v5406_v11 }
 0x18f   : > { %v1646_v8 = vsub.f32 %v1616_v53, %v1645_v63  ;;  %1384 = vmatmul.f32.gmra.mxu0 %v1383_v18  ;;  %1607 = vmatmul.f32.vlgmr.msra.gmra.mxu1 %v5507_v15 }
 0x190   : > { %v1321_v17 = vmin.f32 %v1305_v7, %v1317_v32  ;;  %1793 = vmatpush.msrb.mxu1 %v5453_v16  ;;  %1834 = vmatpush.msrb.mxu2 %v5440_v2 }
 0x191   : > { %v1647_v62 = vand.u32 4294901760, %v1646_v8  ;;  %1875 = vmatpush.msrb.mxu3 %v5422_v52  ;;  %1749 = vmatpush.msrb.mxu0 %v5425_v26 }
 0x192   : > { %v1337_v30 = vmin.f32 %v1321_v17, %v1333_v36  ;;  %1838 = vmatpush.msrb.mxu2 %v5448_v51 }
 0x193   : > { %1719 = vmatmul.f32.vlgmr.msra.gmra.mxu3 %v1645_v63  ;;  %v1648_v11 = vsub.f32 %v1646_v8, %v1647_v62  ;;  %1752 = vmatpush.msrb.mxu0 %v5435_v49 }
 0x194   : > { %v1619_v57 = vsel %vm737_vm4, %v1337_v30, 0  ;;  %1877 = vmatpush.msrb.mxu3 %v5437_v60  ;;  %1842 = vmatpush.msrb.mxu2 %v5463_v1 }
 0x195   : > { %v1653_v4 = vand.u32 4294901760, %v1619_v57  ;;  %v1649_v2 = vand.u32 4294901760, %v1648_v11  ;;  %1755 = vmatpush.msrb.mxu0 %v5451_v12  ;;  %v5582_v11 = vand.u32 4294901760, %v1938_v45 }
 0x196   : > { %1879 = vmatpush.msrb.mxu3 %v5453_v16  ;;  %1846 = vmatpush.msrb.mxu2 %v5474_v61 }
 0x197   : > { %v1654_v52 = vsub.f32 %v1619_v57, %v1653_v4  ;;  %1650 = vmatmul.f32.vlgmr.msra.gmra.mxu2 %v1649_v2  ;;  %1574 = vmatmul.f32.vlgmr.msra.gmra.mxu0 %v5507_v15 }
 0x198   : > { %1611 = vmatmul.f32.gmra.mxu1 %v5512_v3  ;;  %1758 = vmatpush.msrb.mxu0 %v5466_v23 }
 0x199   : > { %v1655_v26 = vand.u32 4294901760, %v1654_v52 }
 0x19b   : > { %1723 = vmatmul.f32.gmra.mxu3 %v1653_v4  ;;  %v1656_v49 = vsub.f32 %v1654_v52, %v1655_v26 }
 0x19d   : > { %v1657_v60 = vand.u32 4294901760, %v1656_v49 }
 0x19f   : > { %1658 = vmatmul.f32.gmra.mxu2 %v1657_v60  ;;  %1578 = vmatmul.f32.gmra.mxu0 %v5512_v3 }
 0x1a0   : > { %1797 = vmatmul.f32.vlgmr.msrb.gmra.mxu1 %v1647_v62 }
 0x1a3   : > { %1881 = vmatmul.f32.vlgmr.msrb.gmra.mxu3 %v1645_v63 }
 0x1a7   : > { %1848 = vmatmul.f32.vlgmr.msrb.gmra.mxu2 %v1645_v63  ;;  %1761 = vmatmul.f32.vlgmr.msrb.gmra.mxu0 %v1646_v8 }
 0x1a8   : > { %1803 = vmatmul.f32.gmra.mxu1 %v1655_v26 }
 0x1ab   : > { %1885 = vmatmul.f32.gmra.mxu3 %v1653_v4 }
 0x1af   : > { %1852 = vmatmul.f32.gmra.mxu2 %v1653_v4  ;;  %1766 = vmatmul.f32.gmra.mxu0 %v1654_v52 }
 0x1fc   : > { %v1446_v0 = vpop.f32.mrf.mxu1 }
 0x204   : > { %v1377_v56 = vpop.f32.mrf.mxu0  ;;  %v1450_v51 = vpop.f32.mrf.mxu1 }
 0x205   : > { %v1488_v16 = vpop.f32.mrf.mxu2  ;;  %v1447_v29 = vadd.f32 %v1446_v0, %v1377_v56 }
 0x206   : > { %v1524_v12 = vpop.f32.mrf.mxu3 }
 0x207   : > { %v1489_v23 = vadd.f32 %v1488_v16, %v1447_v29 }
 0x209   : > { %v1525_v61 = vadd.f32 %v1524_v12, %v1489_v23 }
 0x20c   : > { %v1385_v39 = vpop.f32.mrf.mxu0  ;;  %v1608_v47 = vpop.f32.mrf.mxu1 }
 0x20d   : > { %v1493_v50 = vpop.f32.mrf.mxu2  ;;  %v1451_v21 = vadd.f32 %v1450_v51, %v1385_v39 }
 0x20e   : > { %v1530_v1 = vpop.f32.mrf.mxu3 }
 0x20f   : > { %v1494_v22 = vadd.f32 %v1493_v50, %v1451_v21 }
 0x211   : > { %v1531_v54 = vadd.f32 %v1530_v1, %v1494_v22 }
 0x214   : > { %v1575_v24 = vpop.f32.mrf.mxu0 }
 0x215   : > { %v1576_v20 = vadd.f32 %v1575_v24, %v1525_v61  ;;  %v1612_v41 = vpop.f32.mrf.mxu1 }
 0x216   : > { %v1720_v6 = vpop.f32.mrf.mxu3 }
 0x217   : > { %v1609_v31 = vadd.f32 %v1608_v47, %v1576_v20 }
 0x219   : > { %v4305_v28 = vadd.f32 -0.75, %v1609_v31  ;;  %v3834_v46 = vsub.f32 0.25, %v1609_v31  ;;  %v1894_v38 = vrot.slane %v1609_v31, 1 }
 0x21a   : > { %v1651_v34 = vpop.f32.mrf.mxu2 }
 0x21b   : > { %v3830_v27 = vmax.f32 %v4305_v28, 0.0  ;;  %v3836_v15 = vmax.f32 %v3834_v46, 0.0  ;;  %v1721_v44 = vadd.f32 %v1720_v6, %v1651_v34 }
 0x21c   : > { %v1579_v42 = vpop.f32.mrf.mxu0 }
 0x21d   : > { %v3832_v33 = vmul.f32 4.0, %v3830_v27  ;;  %v3838_v55 = vmul.f32 4.0, %v3836_v15  ;;  %v1580_v3 = vadd.f32 %v1579_v42, %v1531_v54  ;;  %v1798_v63 = vpop.f32.mrf.mxu1 }
 0x21e   : > { %v1724_v58 = vpop.f32.mrf.mxu3 }
 0x21f   : > { %4307 = vst.msk [vmem:[%s5570_s18 + $0x10] sm:$0xff] %vm3846_vm6, %v3832_v33  ;;  %v1613_v43 = vadd.f32 %v1612_v41, %v1580_v3 }
 0x220   : > { %4309 = vst.msk [vmem:[%s5570_s18 + $0x20] sm:$0xff] %vm3846_vm6, %v3838_v55 }
 0x221   : > { %v1895_v14 = vrot.slane %v1613_v43, 1  ;;  %v4306_v48 = vadd.f32 -0.75, %v1613_v43  ;;  %v3835_v35 = vsub.f32 0.25, %v1613_v43 }
 0x222   : > { %v1659_v37 = vpop.f32.mrf.mxu2 }
 0x223   : > { %v3831_v59 = vmax.f32 %v4306_v48, 0.0  ;;  %v3837_v10 = vmax.f32 %v3835_v35, 0.0  ;;  %v1900_v53 = vmax.f32 %v1613_v43, %v1895_v14  ;;  %v1896_v18 = vsel %vm617_vm2, %v1894_v38, %v1895_v14 }
 0x224   : > { %v1762_v13 = vpop.f32.mrf.mxu0  ;;  %v1899_v62 = vmax.f32 %v1609_v31, %v1896_v18  ;;  %v1725_v60 = vadd.f32 %v1724_v58, %v1659_v37 }
 0x225   : > { %v3833_v7 = vmul.f32 4.0, %v3831_v59  ;;  %v3839_v8 = vmul.f32 4.0, %v3837_v10  ;;  %v1763_v32 = vadd.f32 %v1762_v13, %v1721_v44  ;;  %v1915_v17 = vsel %vm617_vm2, %v1900_v53, 0  ;;  %v1804_v39 = vpop.f32.mrf.mxu1 }
 0x226   : > { %v1931_v36 = vand.u32 4294901760, %v1915_v17  ;;  %v1933_v57 = vand.u32 4294901760, %v1899_v62  ;;  %v1882_v2 = vpop.f32.mrf.mxu3 }
 0x227   : > { %4308 = vst.msk [vmem:[%s5570_s18 + $0x18] sm:$0xff] %vm3846_vm6, %v3833_v7  ;;  %v1799_v30 = vadd.f32 %v1798_v63, %v1763_v32 }
 0x228   : > { %4310 = vst.msk [vmem:[%s5570_s18 + $0x28] sm:$0xff] %vm3846_vm6, %v3839_v8  ;;  %1932 = vmatpush.msra.mxu0 %v1931_v36  ;;  %2016 = vmatpush.msra.mxu3 %v1931_v36  ;;  %v1959_v4 = vsub.f32 %v1915_v17, %v1931_v36  ;;  %v1965_v26 = vsub.f32 %v1899_v62, %v1933_v57 }
 0x22a   : > { %v1849_v52 = vpop.f32.mrf.mxu2  ;;  %1934 = vmatpush.msra.mxu0 %v1933_v57  ;;  %1991 = vmatpush.msra.mxu2 %v1959_v4  ;;  %v1960_v49 = vand.u32 4294901760, %v1959_v4  ;;  %v1966_v51 = vand.u32 4294901760, %v1965_v26 }
 0x22b   : > { %v1850_v0 = vadd.f32 %v1849_v52, %v1799_v30  ;;  %2018 = vmatpush.msra.mxu3 %v1933_v57  ;;  %1940 = vmatmul.f32.vlgmr.msra.gmra.mxu0 %v5582_v11 }
 0x22c   : > { %v1767_v56 = vpop.f32.mrf.mxu0  ;;  %1994 = vmatpush.msra.mxu2 %v1965_v26  ;;  %2043 = vmatpush.msrb.mxu0 %v1960_v49  ;;  %v1961_v12 = vsub.f32 %v1959_v4, %v1960_v49  ;;  %v1967_v23 = vsub.f32 %v1965_v26, %v1966_v51 }
 0x22d   : > { %v1883_v16 = vadd.f32 %v1882_v2, %v1850_v0  ;;  %v1768_v29 = vadd.f32 %v1767_v56, %v1725_v60  ;;  %1997 = vmatmul.f32.vlgmr.msra.gmra.mxu2 %v5563_v40  ;;  %2022 = vmatmul.f32.vlgmr.msra.gmra.mxu3 %v5566_v19  ;;  %v1891_v56 = vld [vmem:[%s5877_s4 + $0x8] sm:$0x7f] }
 0x22e   : > { %2047 = vmatpush.msrb.mxu0 %v1966_v51  ;;  %v1962_v1 = vand.u32 4294901760, %v1961_v12  ;;  %v1968_v61 = vand.u32 4294901760, %v1967_v23  ;;  %v1886_v31 = vpop.f32.mrf.mxu3  ;;  %v2252_v51 = vsel %vm617_vm2, %v1891_v56, 0 }
 0x22f   : > { %v4303_v47 = vadd.f32 -0.75, %v1883_v16  ;;  %v3840_v5 = vsub.f32 0.25, %v1883_v16  ;;  %v1805_v50 = vadd.f32 %v1804_v39, %v1768_v29  ;;  %v1903_v46 = vrot.slane %v1883_v16, 1 }
 0x230   : > { %1963 = vmatpush.msra.mxu1 %v1962_v1  ;;  %v2268_v12 = vand.u32 4294901760, %v2252_v51 }
 0x231   : > { %v3824_v21 = vmax.f32 %v4303_v47, 0.0  ;;  %v3842_v9 = vmax.f32 %v3840_v5, 0.0 }
 0x232   : > { %v1853_v24 = vpop.f32.mrf.mxu2  ;;  %1969 = vmatpush.msra.mxu1 %v1968_v61  ;;  %v2296_v29 = vsub.f32 %v2252_v51, %v2268_v12 }
 0x233   : > { %v3826_v20 = vmul.f32 4.0, %v3824_v21  ;;  %v3844_v6 = vmul.f32 4.0, %v3842_v9  ;;  %v1854_v22 = vadd.f32 %v1853_v24, %v1805_v50  ;;  %1971 = vmatmul.f32.vlgmr.msra.gmra.mxu1 %v5560_v25  ;;  %2049 = vmatmul.f32.vlgmr.msrb.gmra.mxu0 %v5560_v25 }
 0x234   : > { %2068 = vmatpush.msrb.mxu1 %v1931_v36  ;;  %v2297_v1 = vand.u32 4294901760, %v2296_v29 }
 0x235   : > { %3847 = vst.msk [vmem:[%s5570_s18] sm:$0xff] %vm3846_vm6, %v3826_v20  ;;  %v1887_v28 = vadd.f32 %v1886_v31, %v1854_v22 }
 0x236   : > { %4311 = vst.msk [vmem:[%s5570_s18 + $0x30] sm:$0xff] %vm3846_vm6, %v3844_v6  ;;  %2070 = vmatpush.msrb.mxu1 %v1933_v57  ;;  %v2298_v47 = vsub.f32 %v2296_v29, %v2297_v1 }
 0x237   : > { %v1904_v41 = vrot.slane %v1887_v28, 1  ;;  %v4304_v34 = vadd.f32 -0.75, %v1887_v28  ;;  %v3841_v54 = vsub.f32 0.25, %v1887_v28 }
 0x238   : > { %v2299_v50 = vand.u32 4294901760, %v2298_v47 }
 0x239   : > { %v3825_v27 = vmax.f32 %v4304_v34, 0.0  ;;  %v3843_v15 = vmax.f32 %v3841_v54, 0.0  ;;  %v1909_v42 = vmin.f32 %v1887_v28, %v1904_v41  ;;  %v1905_v33 = vsel %vm617_vm2, %v1903_v46, %v1904_v41 }
 0x23a   : > { %v1908_v55 = vmin.f32 %v1883_v16, %v1905_v33  ;;  %v1890_v16 = vld [vmem:[%s5877_s4] sm:$0xff] }
 0x23b   : > { %v3827_v3 = vmul.f32 4.0, %v3825_v27  ;;  %v3845_v43 = vmul.f32 4.0, %v3843_v15  ;;  %2072 = vmatmul.f32.vlgmr.msrb.gmra.mxu1 %v5560_v25  ;;  %v2077_v58 = vsel %vm617_vm2, %v1909_v42, 0  ;;  %v2270_v39 = vand.u32 4294901760, %v1890_v16 }
 0x23c   : > { %v2093_v14 = vand.u32 4294901760, %v2077_v58  ;;  %v2095_v48 = vand.u32 4294901760, %v1908_v55 }
 0x23d   : > { %3848 = vst.msk [vmem:[%s5570_s18 + $0x8] sm:$0xff] %vm3846_vm6, %v3827_v3  ;;  %v2302_v23 = vsub.f32 %v1890_v16, %v2270_v39  ;;  %v2575_v3 = vld [vmem:[%s5878_s5] sm:$0xf] }
 0x23e   : > { %4312 = vst.msk [vmem:[%s5570_s18 + $0x38] sm:$0xff] %vm3846_vm6, %v3845_v43  ;;  %2094 = vmatpush.msrb.mxu2 %v2093_v14  ;;  %2178 = vmatpush.msra.mxu1 %v2093_v14  ;;  %v2121_v35 = vsub.f32 %v2077_v58, %v2093_v14  ;;  %v2127_v38 = vsub.f32 %v1908_v55, %v2095_v48  ;;  %v2587_v43 = vsel %vm2585_vm7, %v2575_v3, 0 }
 0x23f   : > { %v2303_v5 = vand.u32 4294901760, %v2302_v23 }
 0x240   : > { %2096 = vmatpush.msrb.mxu2 %v2095_v48  ;;  %2153 = vmatpush.msra.mxu0 %v2121_v35  ;;  %v2122_v37 = vand.u32 4294901760, %v2121_v35  ;;  %v2128_v45 = vand.u32 4294901760, %v2127_v38 }
 0x241   : > { %2180 = vmatpush.msra.mxu1 %v2095_v48  ;;  %2102 = vmatmul.f32.vlgmr.msrb.gmra.mxu2 %v5582_v11  ;;  %v2304_v61 = vsub.f32 %v2302_v23, %v2303_v5 }
 0x242   : > { %2156 = vmatpush.msra.mxu0 %v2127_v38  ;;  %2205 = vmatpush.msra.mxu2 %v2122_v37  ;;  %v2123_v44 = vsub.f32 %v2121_v35, %v2122_v37  ;;  %v2129_v59 = vsub.f32 %v2127_v38, %v2128_v45  ;;  %v5623_v35 = vand.u32 4294901760, %v2587_v43 }
 0x243   : > { %2159 = vmatmul.f32.vlgmr.msra.gmra.mxu0 %v5563_v40  ;;  %2184 = vmatmul.f32.vlgmr.msra.gmra.mxu1 %v5566_v19  ;;  %v2305_v21 = vand.u32 4294901760, %v2304_v61 }
 0x244   : > { %2209 = vmatpush.msra.mxu2 %v2128_v45  ;;  %v2124_v10 = vand.u32 4294901760, %v2123_v44  ;;  %v2130_v53 = vand.u32 4294901760, %v2129_v59  ;;  %2269 = vmatpush.msrb.mxu0 %v2268_v12  ;;  %v5626_v45 = vsub.f32 %v2587_v43, %v5623_v35 }
 0x245   : > { %2300 = vmatpush.msrb.mxu1 %v2299_v50 }
 0x246   : > { %2125 = vmatpush.msrb.mxu3 %v2124_v10  ;;  %2328 = vmatpush.msrb.mxu2 %v2296_v29 }
 0x247   : > { %2271 = vmatpush.msrb.mxu0 %v2270_v39  ;;  %2306 = vmatpush.msrb.mxu1 %v2305_v21 }
 0x248   : > { %2131 = vmatpush.msrb.mxu3 %v2130_v53  ;;  %2331 = vmatpush.msrb.mxu2 %v2302_v23 }
 0x249   : > { %2133 = vmatmul.f32.vlgmr.msrb.gmra.mxu3 %v5560_v25  ;;  %2211 = vmatmul.f32.vlgmr.msra.gmra.mxu2 %v5560_v25 }
 0x24a   : > { %2230 = vmatpush.msra.mxu3 %v2093_v14  ;;  %2380 = vmatpush.msra.mxu0 %v2297_v1 }
 0x24b   : > { %2431 = vmatpush.msra.mxu2 %v2268_v12  ;;  %2405 = vmatpush.msra.mxu1 %v2268_v12 }
 0x24c   : > { %2232 = vmatpush.msra.mxu3 %v2095_v48  ;;  %2384 = vmatpush.msra.mxu0 %v2303_v5 }
 0x24d   : > { %2433 = vmatpush.msra.mxu2 %v2270_v39  ;;  %2407 = vmatpush.msra.mxu1 %v2270_v39 }
 0x24e   : > { %2353 = vmatpush.msrb.mxu3 %v2268_v12 }
 0x250   : > { %2355 = vmatpush.msrb.mxu3 %v2270_v39 }
 0x251   : > { %2234 = vmatmul.f32.vlgmr.msra.gmra.mxu3 %v5560_v25 }
 0x252   : > { %2462 = vmatpush.msra.mxu3 %v2299_v50 }
 0x254   : > { %2468 = vmatpush.msra.mxu3 %v2305_v21 }
 0x2a8   : > { %v1941_v63 = vpop.f32.mrf.mxu0 }
 0x2b0   : > { %v1972_v13 = vpop.f32.mrf.mxu1  ;;  %v1998_v18 = vpop.f32.mrf.mxu2 }
 0x2b1   : > { %v1973_v7 = vadd.f32 %v1972_v13, %v1941_v63  ;;  %v2023_v40 = vpop.f32.mrf.mxu3  ;;  %v2050_v19 = vpop.f32.mrf.mxu0  ;;  %v2611_v63 = vand.u32 4294901760, %v5626_v45 }
 0x2b3   : > { %v1999_v8 = vadd.f32 %v1998_v18, %v1973_v7 }
 0x2b5   : > { %v2024_v32 = vadd.f32 %v2023_v40, %v1999_v8 }
 0x2b7   : > { %v2051_v17 = vadd.f32 %v2050_v19, %v2024_v32  ;;  %v2612_v19 = vsub.f32 %v5626_v45, %v2611_v63 }
 0x2b8   : > { %v2073_v36 = vpop.f32.mrf.mxu1 }
 0x2b9   : > { %v2074_v62 = vadd.f32 %v2073_v36, %v2051_v17 }
 0x2bb   : > { %2239 = vrot.lane.b32.xlu0 %v2074_v62, %s4643_s23 }
 0x2c0   : > { %v2160_v57 = vpop.f32.mrf.mxu0  ;;  %v2185_v2 = vpop.f32.mrf.mxu1 }
 0x2c4   : > { %v2103_v30 = vpop.f32.mrf.mxu2 }
 0x2cc   : > { %v2134_v11 = vpop.f32.mrf.mxu3  ;;  %v2212_v25 = vpop.f32.mrf.mxu2 }
 0x2cd   : > { %v2135_v4 = vadd.f32 %v2134_v11, %v2103_v30 }
 0x2cf   : > { %v2161_v52 = vadd.f32 %v2160_v57, %v2135_v4  ;;  %v2613_v57 = vand.u32 4294901760, %v2612_v19 }
 0x2d1   : > { %v2186_v26 = vadd.f32 %v2185_v2, %v2161_v52 }
 0x2d3   : > { %v2213_v49 = vadd.f32 %v2212_v25, %v2186_v26 }
 0x2d4   : > { %v2235_v60 = vpop.f32.mrf.mxu3 }
 0x2d5   : > { %v2236_v0 = vadd.f32 %v2235_v60, %v2213_v49 }
 0x2d7   : > { %2244 = vrot.lane.b32.xlu1 %v2236_v0, %s4643_s23 }
 0x32d   : > { %v2240_v9 = vpop.permute.xlu0 %2239 }
 0x32e   : > { %v2242_v24 = vmax.f32 %v2074_v62, %v2240_v9 }
 0x330   : > { %v2249_v20 = vsel %vm1910_vm5, %v2242_v24, 0 }
 0x331   : > { %v2272_v6 = vand.u32 4294901760, %v2249_v20 }
 0x333   : > { %v2273_v22 = vsub.f32 %v2249_v20, %v2272_v6  ;;  %2308 = vmatmul.f32.vlgmr.msrb.gmra.mxu1 %v2272_v6 }
 0x334   : > { %2515 = vmatpush.msrb.mxu1 %v2268_v12 }
 0x335   : > { %2334 = vmatmul.f32.vlgmr.msrb.gmra.mxu2 %v2273_v22  ;;  %v2274_v31 = vand.u32 4294901760, %v2273_v22 }
 0x336   : > { %2517 = vmatpush.msrb.mxu1 %v2270_v39  ;;  %2542 = vmatpush.msrb.mxu2 %v2297_v1 }
 0x337   : > { %2359 = vmatmul.f32.vlgmr.msrb.gmra.mxu3 %v2274_v31  ;;  %v2275_v28 = vsub.f32 %v2273_v22, %v2274_v31 }
 0x338   : > { %2567 = vmatpush.msrb.mxu3 %v2268_v12  ;;  %2546 = vmatpush.msrb.mxu2 %v2303_v5 }
 0x339   : > { %v2276_v46 = vand.u32 4294901760, %v2275_v28 }
 0x33a   : > { %2569 = vmatpush.msrb.mxu3 %v2270_v39 }
 0x33b   : > { %2277 = vmatmul.f32.vlgmr.msrb.gmra.mxu0 %v2276_v46  ;;  %2409 = vmatmul.f32.vlgmr.msra.gmra.mxu1 %v2272_v6 }
 0x33c   : > { %2490 = vmatpush.msrb.mxu0 %v2296_v29 }
 0x33e   : > { %2493 = vmatpush.msrb.mxu0 %v2302_v23 }
 0x343   : > { %2386 = vmatmul.f32.vlgmr.msra.gmra.mxu0 %v2272_v6 }
 0x349   : > { %v2245_v41 = vpop.permute.xlu1 %2244 }
 0x34a   : > { %v2247_v34 = vmin.f32 %v2236_v0, %v2245_v41 }
 0x34c   : > { %v2414_v54 = vsel %vm1910_vm5, %v2247_v34, 0 }
 0x34d   : > { %v2434_v27 = vand.u32 4294901760, %v2414_v54 }
 0x34f   : > { %v2435_v15 = vsub.f32 %v2414_v54, %v2434_v27  ;;  %2470 = vmatmul.f32.vlgmr.msra.gmra.mxu3 %v2434_v27 }
 0x351   : > { %2496 = vmatmul.f32.vlgmr.msrb.gmra.mxu0 %v2435_v15  ;;  %v2436_v42 = vand.u32 4294901760, %v2435_v15 }
 0x353   : > { %2521 = vmatmul.f32.vlgmr.msrb.gmra.mxu1 %v2436_v42  ;;  %v2437_v33 = vsub.f32 %v2435_v15, %v2436_v42 }
 0x355   : > { %v2438_v55 = vand.u32 4294901760, %v2437_v33 }
 0x357   : > { %2439 = vmatmul.f32.vlgmr.msra.gmra.mxu2 %v2438_v55  ;;  %2571 = vmatmul.f32.vlgmr.msrb.gmra.mxu3 %v2434_v27 }
 0x35f   : > { %2548 = vmatmul.f32.vlgmr.msrb.gmra.mxu2 %v2434_v27 }
 0x3b0   : > { %v2309_v58 = vpop.f32.mrf.mxu1 }
 0x3b8   : > { %v2278_v14 = vpop.f32.mrf.mxu0  ;;  %v2335_v38 = vpop.f32.mrf.mxu2 }
 0x3b9   : > { %v2310_v48 = vadd.f32 %v2309_v58, %v2278_v14  ;;  %v2410_v13 = vpop.f32.mrf.mxu1 }
 0x3ba   : > { %v2360_v44 = vpop.f32.mrf.mxu3 }
 0x3bb   : > { %v2336_v37 = vadd.f32 %v2335_v38, %v2310_v48 }
 0x3bd   : > { %v2361_v59 = vadd.f32 %v2360_v44, %v2336_v37 }
 0x3c0   : > { %v2387_v10 = vpop.f32.mrf.mxu0 }
 0x3c1   : > { %v2388_v53 = vadd.f32 %v2387_v10, %v2361_v59 }
 0x3c3   : > { %v2411_v18 = vadd.f32 %v2410_v13, %v2388_v53 }
 0x3c5   : > { %v2578_v7 = vrot.slane %v2411_v18, 1  ;;  %v4314_v40 = vadd.f32 -0.75, %v2411_v18  ;;  %v3865_v8 = vsub.f32 0.25, %v2411_v18 }
 0x3c7   : > { %v3863_v32 = vmax.f32 %v4314_v40, 0.0  ;;  %v3866_v17 = vmax.f32 %v3865_v8, 0.0  ;;  %v2580_v36 = vmax.f32 %v2411_v18, %v2578_v7  ;;  %v2576_v18 = vld [vmem:[%s5829_s6] sm:$0x7f] }
 0x3c8   : > { %v2901_v7 = vsel %vm617_vm2, %v2576_v18, 0 }
 0x3c9   : > { %v3864_v62 = vmul.f32 4.0, %v3863_v32  ;;  %v3867_v30 = vmul.f32 4.0, %v3866_v17  ;;  %v2590_v11 = vsel %vm617_vm2, %v2580_v36, 0  ;;  %v2918_v40 = vand.u32 4294901760, %v2901_v7 }
 0x3ca   : > { %v2607_v4 = vand.u32 4294901760, %v2590_v11 }
 0x3cb   : > { %4315 = vst.msk [vmem:[%s5632_s25 + $0x8] sm:$0xff] %vm3872_vm8, %v3864_v62  ;;  %v2945_v8 = vsub.f32 %v2901_v7, %v2918_v40 }
 0x3cc   : > { %4316 = vst.msk [vmem:[%s5632_s25 + $0x10] sm:$0xff] %vm3872_vm8, %v3867_v30  ;;  %2608 = vmatpush.msra.mxu0 %v2607_v4  ;;  %2684 = vmatpush.msra.mxu3 %v2607_v4  ;;  %v2634_v2 = vsub.f32 %v2590_v11, %v2607_v4 }
 0x3cd   : > { %2614 = vmatmul.f32.vlgmr.msra.gmra.mxu0 %v2613_v57  ;;  %2688 = vmatmul.f32.vlgmr.msra.gmra.mxu3 %v2611_v63  ;;  %v2946_v19 = vand.u32 4294901760, %v2945_v8 }
 0x3ce   : > { %2661 = vmatpush.msra.mxu2 %v2634_v2  ;;  %v2635_v52 = vand.u32 4294901760, %v2634_v2  ;;  %v2497_v56 = vpop.f32.mrf.mxu0 }
 0x3cf   : > { %2664 = vmatmul.f32.vlgmr.msra.gmra.mxu2 %v5626_v45  ;;  %v2947_v32 = vsub.f32 %v2945_v8, %v2946_v19 }
 0x3d0   : > { %2710 = vmatpush.msrb.mxu0 %v2635_v52  ;;  %v2636_v25 = vsub.f32 %v2634_v2, %v2635_v52  ;;  %v2522_v12 = vpop.f32.mrf.mxu1 }
 0x3d1   : > { %v2948_v17 = vand.u32 4294901760, %v2947_v32 }
 0x3d2   : > { %v2637_v26 = vand.u32 4294901760, %v2636_v25  ;;  %v2471_v49 = vpop.f32.mrf.mxu3 }
 0x3d4   : > { %2638 = vmatpush.msra.mxu1 %v2637_v26 }
 0x3d5   : > { %2640 = vmatmul.f32.vlgmr.msra.gmra.mxu1 %v5623_v35  ;;  %2712 = vmatmul.f32.vlgmr.msrb.gmra.mxu0 %v5623_v35 }
 0x3d6   : > { %2732 = vmatpush.msrb.mxu1 %v2607_v4 }
 0x3da   : > { %v2440_v60 = vpop.f32.mrf.mxu2  ;;  %v2572_v1 = vpop.f32.mrf.mxu3 }
 0x3db   : > { %v2472_v0 = vadd.f32 %v2471_v49, %v2440_v60 }
 0x3dd   : > { %v2498_v51 = vadd.f32 %v2497_v56, %v2472_v0  ;;  %2734 = vmatmul.f32.vlgmr.msrb.gmra.mxu1 %v5623_v35 }
 0x3df   : > { %v2523_v16 = vadd.f32 %v2522_v12, %v2498_v51 }
 0x3e2   : > { %v2549_v29 = vpop.f32.mrf.mxu2 }
 0x3e3   : > { %v2550_v39 = vadd.f32 %v2549_v29, %v2523_v16  ;;  %v3198_v16 = vld [vmem:[%s5830_s7] sm:$0x3] }
 0x3e4   : > { %v3210_v29 = vsel %vm3208_vm9, %v3198_v16, 0 }
 0x3e5   : > { %v2573_v23 = vadd.f32 %v2572_v1, %v2550_v39 }
 0x3e7   : > { %v2582_v47 = vrot.slane %v2573_v23, 1  ;;  %v4313_v5 = vadd.f32 -0.75, %v2573_v23  ;;  %v3868_v50 = vsub.f32 0.25, %v2573_v23 }
 0x3e9   : > { %v3860_v61 = vmax.f32 %v4313_v5, 0.0  ;;  %v3869_v21 = vmax.f32 %v3868_v50, 0.0  ;;  %v2584_v9 = vmin.f32 %v2573_v23, %v2582_v47  ;;  %v5663_v47 = vand.u32 4294901760, %v3210_v29 }
 0x3eb   : > { %v3861_v24 = vmul.f32 4.0, %v3860_v61  ;;  %v3870_v20 = vmul.f32 4.0, %v3869_v21  ;;  %v2739_v6 = vsel %vm617_vm2, %v2584_v9, 0  ;;  %v5666_v61 = vsub.f32 %v3210_v29, %v5663_v47 }
 0x3ec   : > { %v2756_v22 = vand.u32 4294901760, %v2739_v6 }
 0x3ed   : > { %3873 = vst.msk [vmem:[%s5632_s25] sm:$0xff] %vm3872_vm8, %v3861_v24 }
 0x3ee   : > { %4317 = vst.msk [vmem:[%s5632_s25 + $0x18] sm:$0xff] %vm3872_vm8, %v3870_v20  ;;  %2757 = vmatpush.msrb.mxu2 %v2756_v22  ;;  %2833 = vmatpush.msra.mxu1 %v2756_v22  ;;  %v2783_v31 = vsub.f32 %v2739_v6, %v2756_v22  ;;  %v5669_v6 = vand.u32 4294901760, %v5666_v61 }
 0x3ef   : > { %2763 = vmatmul.f32.vlgmr.msrb.gmra.mxu2 %v2613_v57  ;;  %2837 = vmatmul.f32.vlgmr.msra.gmra.mxu1 %v2611_v63 }
 0x3f0   : > { %2810 = vmatpush.msra.mxu0 %v2783_v31  ;;  %v2784_v28 = vand.u32 4294901760, %v2783_v31  ;;  %2949 = vmatpush.msrb.mxu1 %v2948_v17 }
 0x3f1   : > { %2813 = vmatmul.f32.vlgmr.msra.gmra.mxu0 %v5626_v45 }
 0x3f2   : > { %2859 = vmatpush.msra.mxu2 %v2784_v28  ;;  %v2785_v46 = vsub.f32 %v2783_v31, %v2784_v28  ;;  %2919 = vmatpush.msrb.mxu0 %v2918_v40 }
 0x3f3   : > { %3043 = vmatpush.msra.mxu1 %v2918_v40 }
 0x3f4   : > { %v2786_v41 = vand.u32 4294901760, %v2785_v46  ;;  %2972 = vmatpush.msrb.mxu2 %v2945_v8  ;;  %3021 = vmatpush.msra.mxu0 %v2946_v19 }
 0x3f6   : > { %2787 = vmatpush.msrb.mxu3 %v2786_v41 }
 0x3f7   : > { %2789 = vmatmul.f32.vlgmr.msrb.gmra.mxu3 %v5623_v35  ;;  %2861 = vmatmul.f32.vlgmr.msra.gmra.mxu2 %v5623_v35 }
 0x3f8   : > { %2881 = vmatpush.msra.mxu3 %v2756_v22  ;;  %3068 = vmatpush.msra.mxu2 %v2918_v40 }
 0x3fa   : > { %2995 = vmatpush.msrb.mxu3 %v2918_v40 }
 0x3ff   : > { %2883 = vmatmul.f32.vlgmr.msra.gmra.mxu3 %v5623_v35 }
 0x400   : > { %3098 = vmatpush.msra.mxu3 %v2948_v17 }
 0x44a   : > { %v2615_v34 = vpop.f32.mrf.mxu0 }
 0x450   : > { %v2689_v42 = vpop.f32.mrf.mxu3 }
 0x452   : > { %v2641_v54 = vpop.f32.mrf.mxu1  ;;  %v2665_v27 = vpop.f32.mrf.mxu2 }
 0x453   : > { %v2642_v15 = vadd.f32 %v2641_v54, %v2615_v34  ;;  %v2713_v55 = vpop.f32.mrf.mxu0  ;;  %v3236_v34 = vsub.f32 %v5666_v61, %v5669_v6 }
 0x455   : > { %v2666_v33 = vadd.f32 %v2665_v27, %v2642_v15 }
 0x457   : > { %v2690_v3 = vadd.f32 %v2689_v42, %v2666_v33 }
 0x459   : > { %v2714_v43 = vadd.f32 %v2713_v55, %v2690_v3  ;;  %v3237_v3 = vand.u32 4294901760, %v3236_v34 }
 0x45a   : > { %v2735_v58 = vpop.f32.mrf.mxu1 }
 0x45b   : > { %v2736_v14 = vadd.f32 %v2735_v58, %v2714_v43 }
 0x45d   : > { %2888 = vrot.lane.b32.xlu2 %v2736_v14, %s4643_s23 }
 0x46c   : > { %v2838_v44 = vpop.f32.mrf.mxu1 }
 0x46e   : > { %v2814_v37 = vpop.f32.mrf.mxu0 }
 0x472   : > { %v2764_v48 = vpop.f32.mrf.mxu2 }
 0x47a   : > { %v2790_v38 = vpop.f32.mrf.mxu3  ;;  %v2862_v35 = vpop.f32.mrf.mxu2 }
 0x47b   : > { %v2791_v45 = vadd.f32 %v2790_v38, %v2764_v48 }
 0x47d   : > { %v2815_v59 = vadd.f32 %v2814_v37, %v2791_v45 }
 0x47f   : > { %v2839_v10 = vadd.f32 %v2838_v44, %v2815_v59 }
 0x481   : > { %v2863_v53 = vadd.f32 %v2862_v35, %v2839_v10 }
 0x482   : > { %v2884_v63 = vpop.f32.mrf.mxu3 }
 0x483   : > { %v2885_v13 = vadd.f32 %v2884_v63, %v2863_v53 }
 0x485   : > { %2893 = vrot.lane.b32.xlu0 %v2885_v13, %s4643_s23 }
 0x4b7   : > { %v2889_v36 = vpop.permute.xlu2 %2888 }
 0x4b8   : > { %v2891_v62 = vmax.f32 %v2736_v14, %v2889_v36 }
 0x4ba   : > { %v2898_v30 = vsel %vm2585_vm7, %v2891_v62, 0 }
 0x4bb   : > { %v2920_v11 = vand.u32 4294901760, %v2898_v30 }
 0x4bd   : > { %v2921_v57 = vsub.f32 %v2898_v30, %v2920_v11  ;;  %2951 = vmatmul.f32.vlgmr.msrb.gmra.mxu1 %v2920_v11 }
 0x4be   : > { %3144 = vmatpush.msrb.mxu1 %v2918_v40 }
 0x4bf   : > { %2975 = vmatmul.f32.vlgmr.msrb.gmra.mxu2 %v2921_v57  ;;  %v2922_v4 = vand.u32 4294901760, %v2921_v57 }
 0x4c0   : > { %3170 = vmatpush.msrb.mxu2 %v2946_v19 }
 0x4c1   : > { %2999 = vmatmul.f32.vlgmr.msrb.gmra.mxu3 %v2922_v4  ;;  %v2923_v2 = vsub.f32 %v2921_v57, %v2922_v4 }
 0x4c2   : > { %3192 = vmatpush.msrb.mxu3 %v2918_v40  ;;  %v3199_v40 = vld [vmem:[%s5831_s8] sm:$0x7] }
 0x4c3   : > { %v2924_v52 = vand.u32 4294901760, %v2923_v2  ;;  %v3525_v30 = vsel %vm3212_vm10, %v3199_v40, 0 }
 0x4c5   : > { %2925 = vmatmul.f32.vlgmr.msrb.gmra.mxu0 %v2924_v52  ;;  %3045 = vmatmul.f32.vlgmr.msra.gmra.mxu1 %v2920_v11  ;;  %v5691_v52 = vand.u32 4294901760, %v3525_v30 }
 0x4c6   : > { %3121 = vmatpush.msrb.mxu0 %v2945_v8 }
 0x4cd   : > { %3023 = vmatmul.f32.vlgmr.msra.gmra.mxu0 %v2920_v11 }
 0x4f7   : > { %v2894_v25 = vpop.permute.xlu0 %2893 }
 0x4f8   : > { %v2896_v26 = vmin.f32 %v2885_v13, %v2894_v25 }
 0x4fa   : > { %v3050_v49 = vsel %vm2585_vm7, %v2896_v26, 0 }
 0x4fb   : > { %v3069_v60 = vand.u32 4294901760, %v3050_v49 }
 0x4fd   : > { %v3070_v0 = vsub.f32 %v3050_v49, %v3069_v60  ;;  %3100 = vmatmul.f32.vlgmr.msra.gmra.mxu3 %v3069_v60  ;;  %v3569_v49 = vsub.f32 %v3525_v30, %v5691_v52 }
 0x4ff   : > { %3124 = vmatmul.f32.vlgmr.msrb.gmra.mxu0 %v3070_v0  ;;  %v3071_v56 = vand.u32 4294901760, %v3070_v0  ;;  %v3570_v34 = vand.u32 4294901760, %v3569_v49 }
 0x501   : > { %3148 = vmatmul.f32.vlgmr.msrb.gmra.mxu1 %v3071_v56  ;;  %v3072_v51 = vsub.f32 %v3070_v0, %v3071_v56 }
 0x503   : > { %v3073_v12 = vand.u32 4294901760, %v3072_v51 }
 0x505   : > { %3074 = vmatmul.f32.vlgmr.msra.gmra.mxu2 %v3073_v12  ;;  %3194 = vmatmul.f32.vlgmr.msrb.gmra.mxu3 %v3069_v60 }
 0x50d   : > { %3172 = vmatmul.f32.vlgmr.msrb.gmra.mxu2 %v3069_v60 }
 0x53a   : > { %v2952_v39 = vpop.f32.mrf.mxu1 }
 0x542   : > { %v2926_v1 = vpop.f32.mrf.mxu0  ;;  %v2976_v5 = vpop.f32.mrf.mxu2 }
 0x543   : > { %v2953_v23 = vadd.f32 %v2952_v39, %v2926_v1  ;;  %v3046_v22 = vpop.f32.mrf.mxu1 }
 0x544   : > { %v3000_v21 = vpop.f32.mrf.mxu3 }
 0x545   : > { %v2977_v50 = vadd.f32 %v2976_v5, %v2953_v23 }
 0x547   : > { %v3001_v9 = vadd.f32 %v3000_v21, %v2977_v50 }
 0x54a   : > { %v3024_v24 = vpop.f32.mrf.mxu0 }
 0x54b   : > { %v3025_v20 = vadd.f32 %v3024_v24, %v3001_v9 }
 0x54d   : > { %v3047_v31 = vadd.f32 %v3046_v22, %v3025_v20 }
 0x54f   : > { %v3201_v28 = vrot.slane %v3047_v31, 1  ;;  %v4319_v46 = vadd.f32 -0.75, %v3047_v31  ;;  %v3890_v41 = vsub.f32 0.25, %v3047_v31 }
 0x551   : > { %v3888_v54 = vmax.f32 %v4319_v46, 0.0  ;;  %v3891_v27 = vmax.f32 %v3890_v41, 0.0  ;;  %v3203_v15 = vmax.f32 %v3047_v31, %v3201_v28 }
 0x553   : > { %v3889_v42 = vmul.f32 4.0, %v3888_v54  ;;  %v3892_v33 = vmul.f32 4.0, %v3891_v27  ;;  %v3214_v55 = vsel %vm3212_vm10, %v3203_v15, 0  ;;  %v3571_v54 = vsub.f32 %v3569_v49, %v3570_v34 }
 0x554   : > { %v3231_v43 = vand.u32 4294901760, %v3214_v55 }
 0x555   : > { %4320 = vst.msk [vmem:[%s5675_s22 + $0x4] sm:$0xf] %vm3897_vm11, %v3889_v42  ;;  %v3572_v27 = vand.u32 4294901760, %v3571_v54 }
 0x556   : > { %4321 = vst.msk [vmem:[%s5675_s22 + $0x8] sm:$0xf] %vm3897_vm11, %v3892_v33  ;;  %3232 = vmatpush.msra.mxu0 %v3231_v43  ;;  %3308 = vmatpush.msra.mxu3 %v3231_v43  ;;  %v3258_v58 = vsub.f32 %v3214_v55, %v3231_v43 }
 0x557   : > { %3238 = vmatmul.f32.vlgmr.msra.gmra.mxu0 %v3237_v3  ;;  %3312 = vmatmul.f32.vlgmr.msra.gmra.mxu3 %v5669_v6 }
 0x558   : > { %3285 = vmatpush.msra.mxu2 %v3258_v58  ;;  %v3259_v14 = vand.u32 4294901760, %v3258_v58 }
 0x559   : > { %3288 = vmatmul.f32.vlgmr.msra.gmra.mxu2 %v5666_v61 }
 0x55a   : > { %3334 = vmatpush.msrb.mxu0 %v3259_v14  ;;  %v3260_v48 = vsub.f32 %v3258_v58, %v3259_v14 }
 0x55c   : > { %v3261_v38 = vand.u32 4294901760, %v3260_v48 }
 0x55e   : > { %3262 = vmatpush.msra.mxu1 %v3261_v38 }
 0x55f   : > { %3264 = vmatmul.f32.vlgmr.msra.gmra.mxu1 %v5663_v47  ;;  %3336 = vmatmul.f32.vlgmr.msrb.gmra.mxu0 %v5663_v47 }
 0x560   : > { %3356 = vmatpush.msrb.mxu1 %v3231_v43 }
 0x567   : > { %3358 = vmatmul.f32.vlgmr.msrb.gmra.mxu1 %v5663_v47 }
 0x57c   : > { %v3125_v59 = vpop.f32.mrf.mxu0 }
 0x57e   : > { %v3149_v10 = vpop.f32.mrf.mxu1 }
 0x580   : > { %v3101_v37 = vpop.f32.mrf.mxu3 }
 0x588   : > { %v3075_v45 = vpop.f32.mrf.mxu2  ;;  %v3195_v18 = vpop.f32.mrf.mxu3 }
 0x589   : > { %v3102_v44 = vadd.f32 %v3101_v37, %v3075_v45 }
 0x58b   : > { %v3126_v35 = vadd.f32 %v3125_v59, %v3102_v44 }
 0x58d   : > { %v3150_v53 = vadd.f32 %v3149_v10, %v3126_v35 }
 0x590   : > { %v3173_v63 = vpop.f32.mrf.mxu2 }
 0x591   : > { %v3174_v13 = vadd.f32 %v3173_v63, %v3150_v53 }
 0x593   : > { %v3196_v7 = vadd.f32 %v3195_v18, %v3174_v13 }
 0x595   : > { %v3205_v8 = vrot.slane %v3196_v7, 1  ;;  %v4318_v19 = vadd.f32 -0.75, %v3196_v7  ;;  %v3893_v32 = vsub.f32 0.25, %v3196_v7 }
 0x597   : > { %v3885_v17 = vmax.f32 %v4318_v19, 0.0  ;;  %v3894_v36 = vmax.f32 %v3893_v32, 0.0  ;;  %v3207_v62 = vmin.f32 %v3196_v7, %v3205_v8 }
 0x599   : > { %v3886_v11 = vmul.f32 4.0, %v3885_v17  ;;  %v3895_v57 = vmul.f32 4.0, %v3894_v36  ;;  %v3363_v4 = vsel %vm3212_vm10, %v3207_v62, 0 }
 0x59a   : > { %v3380_v2 = vand.u32 4294901760, %v3363_v4 }
 0x59b   : > { %3898 = vst.msk [vmem:[%s5675_s22] sm:$0xf] %vm3897_vm11, %v3886_v11 }
 0x59c   : > { %4322 = vst.msk [vmem:[%s5675_s22 + $0xc] sm:$0xf] %vm3897_vm11, %v3895_v57  ;;  %3381 = vmatpush.msrb.mxu2 %v3380_v2  ;;  %3457 = vmatpush.msra.mxu1 %v3380_v2  ;;  %v3407_v25 = vsub.f32 %v3363_v4, %v3380_v2 }
 0x59d   : > { %3387 = vmatmul.f32.vlgmr.msrb.gmra.mxu2 %v3237_v3  ;;  %3461 = vmatmul.f32.vlgmr.msra.gmra.mxu1 %v5669_v6 }
 0x59e   : > { %3434 = vmatpush.msra.mxu0 %v3407_v25  ;;  %v3408_v26 = vand.u32 4294901760, %v3407_v25  ;;  %3573 = vmatpush.msrb.mxu1 %v3572_v27 }
 0x59f   : > { %3437 = vmatmul.f32.vlgmr.msra.gmra.mxu0 %v5666_v61 }
 0x5a0   : > { %3483 = vmatpush.msra.mxu2 %v3408_v26  ;;  %v3409_v60 = vsub.f32 %v3407_v25, %v3408_v26  ;;  %3543 = vmatpush.msrb.mxu0 %v5691_v52 }
 0x5a1   : > { %3667 = vmatpush.msra.mxu1 %v5691_v52 }
 0x5a2   : > { %3596 = vmatpush.msrb.mxu2 %v3569_v49  ;;  %v3410_v0 = vand.u32 4294901760, %v3409_v60  ;;  %3645 = vmatpush.msra.mxu0 %v3570_v34 }
 0x5a4   : > { %3411 = vmatpush.msrb.mxu3 %v3410_v0 }
 0x5a5   : > { %3413 = vmatmul.f32.vlgmr.msrb.gmra.mxu3 %v5663_v47  ;;  %3485 = vmatmul.f32.vlgmr.msra.gmra.mxu2 %v5663_v47 }
 0x5a6   : > { %3505 = vmatpush.msra.mxu3 %v3380_v2  ;;  %3692 = vmatpush.msra.mxu2 %v5691_v52 }
 0x5a8   : > { %3619 = vmatpush.msrb.mxu3 %v5691_v52 }
 0x5ad   : > { %3507 = vmatmul.f32.vlgmr.msra.gmra.mxu3 %v5663_v47 }
 0x5ae   : > { %3722 = vmatpush.msra.mxu3 %v3572_v27 }
 0x5d4   : > { %v3239_v56 = vpop.f32.mrf.mxu0 }
 0x5da   : > { %v3313_v29 = vpop.f32.mrf.mxu3 }
 0x5dc   : > { %v3265_v51 = vpop.f32.mrf.mxu1  ;;  %v3289_v12 = vpop.f32.mrf.mxu2 }
 0x5dd   : > { %v3266_v16 = vadd.f32 %v3265_v51, %v3239_v56  ;;  %v3337_v1 = vpop.f32.mrf.mxu0 }
 0x5df   : > { %v3290_v39 = vadd.f32 %v3289_v12, %v3266_v16 }
 0x5e1   : > { %v3314_v23 = vadd.f32 %v3313_v29, %v3290_v39 }
 0x5e3   : > { %v3338_v5 = vadd.f32 %v3337_v1, %v3314_v23 }
 0x5e4   : > { %v3359_v50 = vpop.f32.mrf.mxu1 }
 0x5e5   : > { %v3360_v61 = vadd.f32 %v3359_v50, %v3338_v5 }
 0x5e7   : > { %3512 = vrot.lane.b32.xlu1 %v3360_v61, %s4643_s23 }
 0x61a   : > { %v3462_v6 = vpop.f32.mrf.mxu1 }
 0x61c   : > { %v3438_v24 = vpop.f32.mrf.mxu0 }
 0x620   : > { %v3388_v21 = vpop.f32.mrf.mxu2 }
 0x628   : > { %v3414_v9 = vpop.f32.mrf.mxu3  ;;  %v3486_v47 = vpop.f32.mrf.mxu2 }
 0x629   : > { %v3415_v20 = vadd.f32 %v3414_v9, %v3388_v21 }
 0x62b   : > { %v3439_v22 = vadd.f32 %v3438_v24, %v3415_v20 }
 0x62d   : > { %v3463_v31 = vadd.f32 %v3462_v6, %v3439_v22 }
 0x62f   : > { %v3487_v28 = vadd.f32 %v3486_v47, %v3463_v31 }
 0x630   : > { %v3508_v46 = vpop.f32.mrf.mxu3 }
 0x631   : > { %v3509_v41 = vadd.f32 %v3508_v46, %v3487_v28 }
 0x633   : > { %3517 = vrot.lane.b32.xlu2 %v3509_v41, %s4643_s23  ;;  %s4345_s23 = sshll.u32 %s4630_s28, 6 }
 0x634   : > { %s3986_s15 = scalar_lea.hbm %s5879_s9, %s4345_s23 }
 0x635   : > { %s3989_s24 = sshll.u32 %s3986_s15, 4  ;;  %s3990_s24 = int_to_ptr.hbm [resolvable:$true] %s3989_s24 }
 0x636   : > { %s4478_s4 = sshra.s32 %s3990_s24, 4  ;;  %s4479_s4 = int_to_ptr.hbm [resolvable:$true] %s4478_s4 }
 0x637   : > { %s4480_s5 = scalar_lea.hbm %s4479_s4, 64  ;;  %p4485_p7 = scmp.lt.s32.totalorder %s4479_s4, %s5879_s9 }
 0x638   : > { %p4481_p4 = scmp.ne.s32.totalorder %s4479_s4, %s4480_s5  ;;  %p4486_p8 = scmp.lt.s32.totalorder %s4484_s14, %s4480_s5 }
 0x63a   : > { %p4482_p5 = pnand %p4481_p4, %p4774_p9  ;;  %p4487_p10 = por %p4486_p8, %p4485_p7 }
 0x63c   : > { %p4483_p6 = pneg %p4482_p5 }
 0x63e   : > { %p4488_p13 = pnand %p4487_p10, %p4483_p6 }
 0x659   : > { %v3513_v15 = vpop.permute.xlu1 %3512 }
 0x65a   : > { %v3515_v42 = vmax.f32 %v3360_v61, %v3513_v15 }
 0x65c   : > { %v3522_v33 = vsel %vm3208_vm9, %v3515_v42, 0 }
 0x65d   : > { %v3544_v55 = vand.u32 4294901760, %v3522_v33 }
 0x65f   : > { %v3545_v3 = vsub.f32 %v3522_v33, %v3544_v55  ;;  %3575 = vmatmul.f32.vlgmr.msrb.gmra.mxu1 %v3544_v55 }
 0x660   : > { %3768 = vmatpush.msrb.mxu1 %v5691_v52 }
 0x661   : > { %v3546_v43 = vand.u32 4294901760, %v3545_v3  ;;  %3599 = vmatmul.f32.vlgmr.msrb.gmra.mxu2 %v3545_v3 }
 0x662   : > { %3794 = vmatpush.msrb.mxu2 %v3570_v34 }
 0x663   : > { %v3547_v58 = vsub.f32 %v3545_v3, %v3546_v43  ;;  %3623 = vmatmul.f32.vlgmr.msrb.gmra.mxu3 %v3546_v43 }
 0x664   : > { %3816 = vmatpush.msrb.mxu3 %v5691_v52 }
 0x665   : > { %v3548_v14 = vand.u32 4294901760, %v3547_v58 }
 0x667   : > { %3549 = vmatmul.f32.vlgmr.msrb.gmra.mxu0 %v3548_v14  ;;  %3669 = vmatmul.f32.vlgmr.msra.gmra.mxu1 %v3544_v55 }
 0x668   : > { %3745 = vmatpush.msrb.mxu0 %v3569_v49 }
 0x66f   : > { %3647 = vmatmul.f32.vlgmr.msra.gmra.mxu0 %v3544_v55 }
 0x68d   : > { %v3518_v48 = vpop.permute.xlu2 %3517 }
 0x68e   : > { %v3520_v38 = vmin.f32 %v3509_v41, %v3518_v48 }
 0x690   : > { %v3674_v37 = vsel %vm3208_vm9, %v3520_v38, 0 }
 0x691   : > { %v3693_v45 = vand.u32 4294901760, %v3674_v37 }
 0x693   : > { %v3694_v44 = vsub.f32 %v3674_v37, %v3693_v45  ;;  %3724 = vmatmul.f32.vlgmr.msra.gmra.mxu3 %v3693_v45 }
 0x695   : > { %v3695_v59 = vand.u32 4294901760, %v3694_v44  ;;  %3748 = vmatmul.f32.vlgmr.msrb.gmra.mxu0 %v3694_v44 }
 0x697   : > { %v3696_v35 = vsub.f32 %v3694_v44, %v3695_v59  ;;  %3772 = vmatmul.f32.vlgmr.msrb.gmra.mxu1 %v3695_v59 }
 0x699   : > { %v3697_v10 = vand.u32 4294901760, %v3696_v35 }
 0x69b   : > { %3698 = vmatmul.f32.vlgmr.msra.gmra.mxu2 %v3697_v10  ;;  %3818 = vmatmul.f32.vlgmr.msrb.gmra.mxu3 %v3693_v45 }
 0x6a3   : > { %3796 = vmatmul.f32.vlgmr.msrb.gmra.mxu2 %v3693_v45 }
 0x6a4   : > { %4491 = shalt.err (!%p4488_p13)
}
 0x6a5   : > { %s4645_s0 = smov 128   ;;  %s4646_s15 = smov 8  }
 0x6a6   : > { %4351 = dma.vmem_to_hbm [thread:$0]  (%p4774_p9), %s3988_s20, 1024, %s3990_s24, %s5723_s3, %s4645_s0, %s4645_s0, %s4646_s15  }
 0x6a7   : > { %s3968_s16 = sshll.u32 %s4854_s10, 4  ;;  %s3970_s11 = sshll.u32 %s3967_s2, 4  ;;  %s3969_s16 = int_to_ptr.vmem [resolvable:$true] %s3968_s16  ;;  %s3971_s11 = int_to_ptr.hbm [resolvable:$true] %s3970_s11 }
 0x6a8   : > { %s3934_s4 = scalar_lea.sflag [#allocation4], %s4799_s13  ;;  %s4506_s5 = sshra.s32 %s3971_s11, 4  ;;  %s4507_s5 = int_to_ptr.hbm [resolvable:$true] %s4506_s5 }
 0x6a9   : > { %s4508_s19 = scalar_lea.hbm %s4507_s5, 128  ;;  %s4512_s14 = scalar_lea.hbm %s5880_s1, 256 }
 0x6aa   : > { %p4509_p0 = scmp.ne.s32.totalorder %s4507_s5, %s4508_s19  ;;  %p4513_p3 = scmp.lt.s32.totalorder %s4507_s5, %s5880_s1 }
 0x6ab   : > { %p4514_p4 = scmp.lt.s32.totalorder %s4512_s14, %s4508_s19 }
 0x6ac   : > { %p4510_p1 = pnand %p4509_p0, %p4774_p9 }
 0x6ad   : > { %p4515_p5 = por %p4514_p4, %p4513_p3 }
 0x6ae   : > { %p4511_p2 = pneg %p4510_p1 }
 0x6b0   : > { %p4516_p6 = pnand %p4515_p5, %p4511_p2 }
 0x6b2   : > { %4519 = shalt.err (!%p4516_p6)
}
 0x6b3   : > { %4350 = dma.vmem_to_hbm [thread:$0]  (%p4774_p9), %s3969_s16, 2048, %s3971_s11, %s3934_s4, %s4645_s0, %s4645_s0, %s4646_s15  }
 0x6b4   : > { %s4346_s2 = sshll.u32 %s4630_s28, 5  ;;  %s4004_s10 = sshll.u32 %s5632_s25, 4  ;;  %s4005_s10 = int_to_ptr.vmem [resolvable:$true] %s4004_s10 }
 0x6b5   : > { %s5881_s23 = sld [smem:[#allocation27_spill]]  ;;  %s4347_s17 = sshll.u32 %s4630_s28, 4 }
 0x6bb   : > { %s4003_s5 = scalar_lea.hbm %s5881_s23, %s4346_s2  ;;  %s4540_s16 = scalar_lea.hbm %s5881_s23, 64 }
 0x6bc   : > { %s4006_s19 = sshll.u32 %s4003_s5, 4  ;;  %s4007_s19 = int_to_ptr.hbm [resolvable:$true] %s4006_s19 }
 0x6bd   : > { %s4534_s14 = sshra.s32 %s4007_s19, 4  ;;  %s4535_s14 = int_to_ptr.hbm [resolvable:$true] %s4534_s14 }
 0x6be   : > { %s4536_s18 = scalar_lea.hbm %s4535_s14, 32  ;;  %p4541_p13 = scmp.lt.s32.totalorder %s4535_s14, %s5881_s23 }
 0x6bf   : > { %p4537_p7 = scmp.ne.s32.totalorder %s4535_s14, %s4536_s18  ;;  %p4542_p0 = scmp.lt.s32.totalorder %s4540_s16, %s4536_s18 }
 0x6c1   : > { %p4538_p8 = pnand %p4537_p7, %p4774_p9  ;;  %p4543_p1 = por %p4542_p0, %p4541_p13 }
 0x6c3   : > { %p4539_p10 = pneg %p4538_p8 }
 0x6c5   : > { %p4544_p2 = pnand %p4543_p1, %p4539_p10 }
 0x6c7   : > { %4547 = shalt.err (!%p4544_p2)
}
 0x6c8   : > { %4352 = dma.vmem_to_hbm [thread:$0]  (%p4774_p9), %s4005_s10, 512, %s4007_s19, %s5723_s3, %s4645_s0, %s4645_s0, %s4646_s15  }
 0x6c9   : > { %s5882_s2 = sld [smem:[#allocation28_spill]]  ;;  %s4021_s24 = sshll.u32 %s5675_s22, 4  ;;  %s4022_s24 = int_to_ptr.vmem [resolvable:$true] %s4021_s24 }
 0x6ca   : > { %s3949_s14 = scalar_lea.sflag [#allocation10], %s4799_s13 }
 0x6cf   : > { %s4020_s20 = scalar_lea.hbm %s5882_s2, %s4347_s17  ;;  %s4568_s3 = scalar_lea.hbm %s5882_s2, 32 }
 0x6d0   : > { %s4023_s5 = sshll.u32 %s4020_s20, 4  ;;  %s4024_s5 = int_to_ptr.hbm [resolvable:$true] %s4023_s5 }
 0x6d1   : > { %s4562_s18 = sshra.s32 %s4024_s5, 4  ;;  %s4563_s18 = int_to_ptr.hbm [resolvable:$true] %s4562_s18 }
 0x6d2   : > { %s4564_s12 = scalar_lea.hbm %s4563_s18, 16  ;;  %p4569_p6 = scmp.lt.s32.totalorder %s4563_s18, %s5882_s2 }
 0x6d3   : > { %p4565_p3 = scmp.ne.s32.totalorder %s4563_s18, %s4564_s12  ;;  %p4570_p7 = scmp.lt.s32.totalorder %s4568_s3, %s4564_s12 }
 0x6d5   : > { %p4566_p4 = pnand %p4565_p3, %p4774_p9  ;;  %p4571_p8 = por %p4570_p7, %p4569_p6 }
 0x6d7   : > { %p4567_p5 = pneg %p4566_p4 }
 0x6d9   : > { %p4572_p10 = pnand %p4571_p8, %p4567_p5 }
 0x6db   : > { %4575 = shalt.err (!%p4572_p10)
}
 0x6dc   : > { %s4647_s13 = smov 64   ;;  %s4648_s22 = smov 4   ;;  %v3576_v53 = vpop.f32.mrf.mxu1  ;;  %vm3922_vm12 = vcmask 9216  }
 0x6dd   : > { %4353 = dma.vmem_to_hbm [thread:$0]  (%p4774_p9), %s4022_s24, 256, %s4024_s5, %s3949_s14, %s4647_s13, %s4647_s13, %s4648_s22  }
 0x6de   : > { %p520_p13 = scmp.lt.s32.totalorder %s4630_s28, 1  ;;  %s5883_s17 = sld [smem:[#allocation29_spill]] }
 0x6e0   : > { %s5897_s28 = smov (!%p520_p13, %s4630_s28), 1 }
 0x6e1   : > { %s4343_s10 = sshll.u32 %s5897_s28, 3 }
 0x6e4   : > { %v3550_v63 = vpop.f32.mrf.mxu0  ;;  %v3600_v18 = vpop.f32.mrf.mxu2  ;;  %s524_s11 = scalar_lea.vmem %s5883_s17, %s4343_s10 }
 0x6e5   : > { %v3577_v13 = vadd.f32 %v3576_v53, %v3550_v63  ;;  %v3670_v17 = vpop.f32.mrf.mxu1 }
 0x6e6   : > { %v3624_v40 = vpop.f32.mrf.mxu3 }
 0x6e7   : > { %v3601_v7 = vadd.f32 %v3600_v18, %v3577_v13 }
 0x6e9   : > { %v3625_v8 = vadd.f32 %v3624_v40, %v3601_v7 }
 0x6ec   : > { %v3648_v19 = vpop.f32.mrf.mxu0 }
 0x6ed   : > { %v3649_v32 = vadd.f32 %v3648_v19, %v3625_v8 }
 0x6ef   : > { %v3671_v36 = vadd.f32 %v3670_v17, %v3649_v32 }
 0x6f1   : > { %v4324_v62 = vadd.f32 -0.75, %v3671_v36  ;;  %v3915_v30 = vsub.f32 0.25, %v3671_v36 }
 0x6f3   : > { %v3913_v11 = vmax.f32 %v4324_v62, 0.0  ;;  %v3916_v57 = vmax.f32 %v3915_v30, 0.0 }
 0x6f5   : > { %v3914_v4 = vmul.f32 4.0, %v3913_v11  ;;  %v3917_v2 = vmul.f32 4.0, %v3916_v57 }
 0x6f7   : > { %4325 = vst.msk [vmem:[%s524_s11 + $0x2] sm:$0x3] %vm3922_vm12, %v3914_v4 }
 0x6f8   : > { %4326 = vst.msk [vmem:[%s524_s11 + $0x4] sm:$0x3] %vm3922_vm12, %v3917_v2 }
 0x712   : > { %v3749_v49 = vpop.f32.mrf.mxu0 }
 0x714   : > { %v3773_v0 = vpop.f32.mrf.mxu1 }
 0x716   : > { %v3725_v52 = vpop.f32.mrf.mxu3 }
 0x71e   : > { %v3699_v25 = vpop.f32.mrf.mxu2  ;;  %v3819_v16 = vpop.f32.mrf.mxu3 }
 0x71f   : > { %v3726_v26 = vadd.f32 %v3725_v52, %v3699_v25 }
 0x721   : > { %v3750_v60 = vadd.f32 %v3749_v49, %v3726_v26 }
 0x723   : > { %v3774_v56 = vadd.f32 %v3773_v0, %v3750_v60 }
 0x726   : > { %v3797_v51 = vpop.f32.mrf.mxu2 }
 0x727   : > { %v3798_v12 = vadd.f32 %v3797_v51, %v3774_v56 }
 0x729   : > { %v3820_v29 = vadd.f32 %v3819_v16, %v3798_v12 }
 0x72b   : > { %v4323_v39 = vadd.f32 -0.75, %v3820_v29  ;;  %v3918_v1 = vsub.f32 0.25, %v3820_v29 }
 0x72d   : > { %v3910_v23 = vmax.f32 %v4323_v39, 0.0  ;;  %v3919_v5 = vmax.f32 %v3918_v1, 0.0 }
 0x72f   : > { %v3911_v50 = vmul.f32 4.0, %v3910_v23  ;;  %v3920_v61 = vmul.f32 4.0, %v3919_v5 }
 0x731   : > { %3923 = vst.msk [vmem:[%s524_s11] sm:$0x3] %vm3922_vm12, %v3911_v50 }
 0x732   : > { %4327 = vst.msk [vmem:[%s524_s11 + $0x6] sm:$0x3] %vm3922_vm12, %v3920_v61 }
 0x733 PF: > { %s5884_s28 = sld [smem:[#allocation15_spill]]  ;;  %p4363_p9 = pnand %p4275_p12, %p4783_p11 }
 0x735   : > { %p4364_p0 = pneg %p4363_p9 }
 0x739   : > { %s4041_s4 = sand.u32 1, %s5884_s28  }
 0x73a   : > { %s4042_s20 = scalar_lea.sflag [#allocation4], %s4041_s4 }
 0x73b   : > { %4605 = dma.done.wait (%p4364_p0), %s4042_s20, 2048  }
 0x73c   : > { %4607 = vsyncadd (%p4364_p0), %s4042_s20, 4294965248  ;;  %s5886_s24 = sadd.s32 4294967294, %s4638_s30  }
 0x73d   : > { %s4051_s5 = sand.u32 1, %s5886_s24  }
 0x73e   : > { %s4052_s14 = scalar_lea.sflag [#allocation7], %s4051_s5 }
 0x73f   : > { %4609 = dma.done.wait (%p4364_p0), %s4052_s14, 1536  }
 0x740   : > { %4611 = vsyncadd (%p4364_p0), %s4052_s14, 4294965760  ;;  %s4072_s18 = scalar_lea.sflag [#allocation10], %s4041_s4 }
 0x741   : > { %4613 = dma.done.wait (%p4364_p0), %s4072_s18, 256  }
 0x742   : > { %4615 = vsyncadd (%p4364_p0), %s4072_s18, 4294967040  ;;  %s36_s30 = sadd.s32 1, %s4638_s30   ;;  %s5887_s12 = sld [smem:[#allocation17_spill]] }
 0x743   : > { %p33_p1 = scmp.ge.s32.totalorder %s36_s30, 4   ;;  %s5888_s16 = sld [smem:[#allocation16_spill]] }
 0x744   : > { %s5889_s25 = smov %s4622_s26  ;;  %s5890_s26 = smov %s4626_s27 }
 0x745   : > { %s5892_s28 = smov %s4634_s29  ;;  %35 = sbr.rel (!%p33_p1) target bundleno = 22 (0x16), region = 178 }
 0x748   : > { %s5891_s27 = smov %s5887_s12 }
 0x749   : > { %s5893_s29 = smov %s5888_s16 }
 0x74a   :  { %4086 = vsyncpa [#allocation3], 1 }
 0x74b   :  { %4088 = vsyncpa [#allocation3 + $0x1], 1 }
 0x74c   :  { %4089 = vsyncpa [#allocation4], 1 }
 0x74d   :  { %4091 = vsyncpa [#allocation4 + $0x1], 1 }
 0x74e   :  { %4092 = vsyncpa [#allocation7], 1 }
 0x74f   :  { %4094 = vsyncpa [#allocation7 + $0x1], 1 }
 0x750   :  { %4095 = vsyncpa [#allocation10], 1 }
 0x751   :  { %4097 = vsyncpa [#allocation10 + $0x1], 1 }

</bundles_post_ra>
